<compile_context>
chip_gen: v7x
topology: tpu7x:2x2x1
jax: 0.10.0
libtpu: 0.0.40
codegen_flags: <defaults>
</compile_context>

<pallas_src>
import functools

import jax
import jax.numpy as jnp
from jax import lax
from jax.experimental import pallas as pl
from jax.experimental.pallas import tpu as pltpu

KH = KW = 3


# ------------------------------ kernel ------------------------------------- #
def _relu(x, leaky_slope):
    if leaky_slope > 0.0:
        return jnp.where(x >= 0, x, leaky_slope * x)
    return jnp.maximum(x, 0.0)


def tower_kernel(x_ref, w_ref, b_ref, o_ref, *, num_block, H, W, C,
                 leaky_slope):
    """Full GoResNet tower on one image; activation stays in VMEM/vregs.

    x_ref: (1, H, W, C)           one image (NHWC)
    w_ref: (2*num_block, 9*C, C)  im2col-stacked conv weights (tap-major)
    b_ref: (2*num_block, 1, C)    conv biases
    o_ref: (1, H, W, C)
    """
    f32 = jnp.float32
    act = x_ref[0].astype(f32)                       # (H, W, C)
    zrow = jnp.zeros((1, W, C), f32)
    zcol = jnp.zeros((H, 1, C), f32)

    def tap(a, dy, dx):
        """Zero-padded shifted copy: tap[y, x] = a_padded[y+dy, x+dx]."""
        if dy < 0:
            v = jnp.concatenate([zrow, a[:H - 1]], axis=0)
        elif dy > 0:
            v = jnp.concatenate([a[1:], zrow], axis=0)
        else:
            v = a
        if dx < 0:
            return jnp.concatenate([zcol, v[:, :W - 1, :]], axis=1)
        elif dx > 0:
            return jnp.concatenate([v[:, 1:, :], zcol], axis=1)
        return v

    def conv3x3(a, idx):
        # im2col patch (H*W, 9*C); single K=288 MXU matmul per conv.
        cols = [tap(a, ky - 1, kx - 1)
                for ky in range(KH) for kx in range(KW)]
        patch = jnp.concatenate(cols, axis=2).reshape(H * W, KH * KW * C)
        y = jnp.dot(patch, w_ref[idx], preferred_element_type=f32)
        y = y + b_ref[idx]                            # (1, C) broadcast
        return y.reshape(H, W, C)

    for blk in range(num_block):
        resid = act
        h = _relu(conv3x3(act, 2 * blk), leaky_slope)     # conv_lower + relu
        h = conv3x3(h, 2 * blk + 1)                       # conv_upper
        act = _relu(h + resid, leaky_slope)               # residual + relu

    o_ref[0] = act.astype(o_ref.dtype)


# ------------------------------ wrapper ------------------------------------ #
def _stack_conv_params(params):
    """Stack per-conv HWIO weights -> (num_convs, 9*Cin, Cout), biases -> (num_convs, 1, Cout)."""
    ws, bs = [], []
    for (w1, b1, w2, b2) in params:
        for w, b in ((w1, b1), (w2, b2)):
            kh, kw, cin, cout = w.shape
            ws.append(w.reshape(kh * kw * cin, cout))   # row = (ky*KW+kx)*Cin + ci
            bs.append(b.reshape(1, cout))
    return jnp.stack(ws), jnp.stack(bs)


@functools.partial(jax.jit, static_argnames=("leaky_slope",))
def go_resnet_forward(x_nchw, params, leaky_slope=0.0):
    """GoResNet.forward.  x_nchw: (N, C, H, W) like the PyTorch module."""
    N, C, H, W = x_nchw.shape
    num_block = len(params)
    num_conv = 2 * num_block
    w_all, b_all = _stack_conv_params(params)
    x = jnp.transpose(x_nchw, (0, 2, 3, 1))          # NCHW -> NHWC (once)

    kernel = functools.partial(tower_kernel, num_block=num_block,
                               H=H, W=W, C=C, leaky_slope=leaky_slope)
    y = pl.pallas_call(
        kernel,
        out_shape=jax.ShapeDtypeStruct((N, H, W, C), x_nchw.dtype),
        grid=(N,),
        in_specs=[
            pl.BlockSpec((1, H, W, C), lambda i: (i, 0, 0, 0)),
            pl.BlockSpec((num_conv, KH * KW * C, C), lambda i: (0, 0, 0)),
            pl.BlockSpec((num_conv, 1, C), lambda i: (0, 0, 0)),
        ],
        out_specs=pl.BlockSpec((1, H, W, C), lambda i: (i, 0, 0, 0)),
        compiler_params=pltpu.CompilerParams(
            dimension_semantics=("parallel",)),
    )(x, w_all, b_all)

    return jnp.transpose(y, (0, 3, 1, 2))            # NHWC -> NCHW


# ----------------------------- reference ----------------------------------- #
def go_resnet_reference(x_nchw, params, leaky_slope=0.0):
    relu = (lambda v: jnp.where(v >= 0, v, leaky_slope * v)) if leaky_slope > 0 \
        else (lambda v: jnp.maximum(v, 0.0))
    dn = ("NHWC", "HWIO", "NHWC")
    x = jnp.transpose(x_nchw, (0, 2, 3, 1))
    for (w1, b1, w2, b2) in params:
        h = lax.conv_general_dilated(x, w1, (1, 1), "SAME",
                                     dimension_numbers=dn) + b1[0]
        h = relu(h)
        h = lax.conv_general_dilated(h, w2, (1, 1), "SAME",
                                     dimension_numbers=dn) + b2[0]
        x = relu(h + x)
    return jnp.transpose(x, (0, 3, 1, 2))


# ------------------------------- main --------------------------------------- #
if __name__ == "__main__":
    # options: num_block=2, dim=32, bn=False, leaky_relu=False
    N, C, H, W = 2, 32, 8, 8
    num_block = 2
    leaky_slope = 0.0

    key = jax.random.PRNGKey(0)
    keys = jax.random.split(key, 1 + 4 * num_block)
    x_nchw = jax.random.normal(keys[0], (N, C, H, W), jnp.float32)

    # Deterministic PyTorch-like Conv2d init: U(-1/sqrt(fan_in), 1/sqrt(fan_in))
    fan_in = C * KH * KW
    bound = 1.0 / float(fan_in) ** 0.5
    params = []
    for b in range(num_block):
        kw1, kb1, kw2, kb2 = keys[1 + 4 * b: 1 + 4 * b + 4]
        w1 = jax.random.uniform(kw1, (KH, KW, C, C), jnp.float32, -bound, bound)
        b1 = jax.random.uniform(kb1, (1, C), jnp.float32, -bound, bound)
        w2 = jax.random.uniform(kw2, (KH, KW, C, C), jnp.float32, -bound, bound)
        b2 = jax.random.uniform(kb2, (1, C), jnp.float32, -bound, bound)
        params.append((w1, b1, w2, b2))
    params = tuple(params)

    out = go_resnet_forward(x_nchw, params, leaky_slope=leaky_slope)
    out = jax.block_until_ready(out)

    ref = go_resnet_reference(x_nchw, params, leaky_slope=leaky_slope)
    assert out.shape == (N, C, H, W), out.shape
    assert jnp.allclose(out, ref, atol=1e-4, rtol=1e-4), \
        float(jnp.max(jnp.abs(out - ref)))

    print("KERNEL_OK")
</pallas_src>

<mosaic_0001>
module attributes {stable_mosaic.version = 11 : i64} {
  func.func @tower_kernel(%arg0: i32, %arg1: memref<1x8x8x32xf32, #tpu.memory_space<vmem>>, %arg2: memref<4x288x32xf32, #tpu.memory_space<vmem>>, %arg3: memref<4x1x32xf32, #tpu.memory_space<vmem>>, %arg4: memref<1x8x8x32xf32, #tpu.memory_space<vmem>>) attributes {dimension_semantics = [#tpu.dimension_semantics<parallel>], iteration_bounds = array<i64: 2>, scalar_prefetch = 0 : i64, scratch_operands = 0 : i64, tpu.core_type = #tpu.core_type<tc>, window_params = [{transform_indices = @transform_0, window_bounds = array<i64: 1, 8, 8, 32>}, {pipeline_mode = #tpu.pipeline_mode<synchronous>, transform_indices = @transform_1, window_bounds = array<i64: 4, 288, 32>}, {pipeline_mode = #tpu.pipeline_mode<synchronous>, transform_indices = @transform_2, window_bounds = array<i64: 4, 1, 32>}, {transform_indices = @transform_3, window_bounds = array<i64: 1, 8, 8, 32>}]} {
    %c0 = arith.constant 0 : index
    %c0_0 = arith.constant 0 : index
    %c0_1 = arith.constant 0 : index
    %c0_2 = arith.constant 0 : index
    %0 = vector.load %arg1[%c0, %c0_0, %c0_1, %c0_2] : memref<1x8x8x32xf32, #tpu.memory_space<vmem>>, vector<1x8x8x32xf32>
    %1 = vector.shape_cast %0 : vector<1x8x8x32xf32> to vector<8x8x32xf32>
    %cst = arith.constant 0.000000e+00 : f32
    %2 = vector.broadcast %cst : f32 to vector<1x8x32xf32>
    %cst_3 = arith.constant 0.000000e+00 : f32
    %3 = vector.broadcast %cst_3 : f32 to vector<8x1x32xf32>
    %4 = vector.extract_strided_slice %1 {offsets = [0, 0, 0], sizes = [7, 8, 32], strides = [1, 1, 1]} : vector<8x8x32xf32> to vector<7x8x32xf32>
    %5 = tpu.concatenate %2, %4 in 0 : vector<1x8x32xf32>, vector<7x8x32xf32> -> vector<8x8x32xf32>
    %6 = vector.extract_strided_slice %5 {offsets = [0, 0, 0], sizes = [8, 7, 32], strides = [1, 1, 1]} : vector<8x8x32xf32> to vector<8x7x32xf32>
    %7 = tpu.concatenate %3, %6 in 1 : vector<8x1x32xf32>, vector<8x7x32xf32> -> vector<8x8x32xf32>
    %8 = vector.extract_strided_slice %1 {offsets = [0, 0, 0], sizes = [7, 8, 32], strides = [1, 1, 1]} : vector<8x8x32xf32> to vector<7x8x32xf32>
    %9 = tpu.concatenate %2, %8 in 0 : vector<1x8x32xf32>, vector<7x8x32xf32> -> vector<8x8x32xf32>
    %10 = vector.extract_strided_slice %1 {offsets = [0, 0, 0], sizes = [7, 8, 32], strides = [1, 1, 1]} : vector<8x8x32xf32> to vector<7x8x32xf32>
    %11 = tpu.concatenate %2, %10 in 0 : vector<1x8x32xf32>, vector<7x8x32xf32> -> vector<8x8x32xf32>
    %12 = vector.extract_strided_slice %11 {offsets = [0, 1, 0], sizes = [8, 7, 32], strides = [1, 1, 1]} : vector<8x8x32xf32> to vector<8x7x32xf32>
    %13 = tpu.concatenate %12, %3 in 1 : vector<8x7x32xf32>, vector<8x1x32xf32> -> vector<8x8x32xf32>
    %14 = vector.extract_strided_slice %1 {offsets = [0, 0, 0], sizes = [8, 7, 32], strides = [1, 1, 1]} : vector<8x8x32xf32> to vector<8x7x32xf32>
    %15 = tpu.concatenate %3, %14 in 1 : vector<8x1x32xf32>, vector<8x7x32xf32> -> vector<8x8x32xf32>
    %16 = vector.extract_strided_slice %1 {offsets = [0, 1, 0], sizes = [8, 7, 32], strides = [1, 1, 1]} : vector<8x8x32xf32> to vector<8x7x32xf32>
    %17 = tpu.concatenate %16, %3 in 1 : vector<8x7x32xf32>, vector<8x1x32xf32> -> vector<8x8x32xf32>
    %18 = vector.extract_strided_slice %1 {offsets = [1, 0, 0], sizes = [7, 8, 32], strides = [1, 1, 1]} : vector<8x8x32xf32> to vector<7x8x32xf32>
    %19 = tpu.concatenate %18, %2 in 0 : vector<7x8x32xf32>, vector<1x8x32xf32> -> vector<8x8x32xf32>
    %20 = vector.extract_strided_slice %19 {offsets = [0, 0, 0], sizes = [8, 7, 32], strides = [1, 1, 1]} : vector<8x8x32xf32> to vector<8x7x32xf32>
    %21 = tpu.concatenate %3, %20 in 1 : vector<8x1x32xf32>, vector<8x7x32xf32> -> vector<8x8x32xf32>
    %22 = vector.extract_strided_slice %1 {offsets = [1, 0, 0], sizes = [7, 8, 32], strides = [1, 1, 1]} : vector<8x8x32xf32> to vector<7x8x32xf32>
    %23 = tpu.concatenate %22, %2 in 0 : vector<7x8x32xf32>, vector<1x8x32xf32> -> vector<8x8x32xf32>
    %24 = vector.extract_strided_slice %1 {offsets = [1, 0, 0], sizes = [7, 8, 32], strides = [1, 1, 1]} : vector<8x8x32xf32> to vector<7x8x32xf32>
    %25 = tpu.concatenate %24, %2 in 0 : vector<7x8x32xf32>, vector<1x8x32xf32> -> vector<8x8x32xf32>
    %26 = vector.extract_strided_slice %25 {offsets = [0, 1, 0], sizes = [8, 7, 32], strides = [1, 1, 1]} : vector<8x8x32xf32> to vector<8x7x32xf32>
    %27 = tpu.concatenate %26, %3 in 1 : vector<8x7x32xf32>, vector<8x1x32xf32> -> vector<8x8x32xf32>
    %28 = tpu.concatenate %7, %9, %13, %15, %1, %17, %21, %23, %27 in 2 : vector<8x8x32xf32>, vector<8x8x32xf32>, vector<8x8x32xf32>, vector<8x8x32xf32>, vector<8x8x32xf32>, vector<8x8x32xf32>, vector<8x8x32xf32>, vector<8x8x32xf32>, vector<8x8x32xf32> -> vector<8x8x288xf32>
    %29 = vector.shape_cast %28 : vector<8x8x288xf32> to vector<64x288xf32>
    %c0_4 = arith.constant 0 : index
    %c0_5 = arith.constant 0 : index
    %c0_6 = arith.constant 0 : index
    %30 = vector.load %arg2[%c0_4, %c0_5, %c0_6] : memref<4x288x32xf32, #tpu.memory_space<vmem>>, vector<1x288x32xf32>
    %31 = vector.shape_cast %30 : vector<1x288x32xf32> to vector<288x32xf32>
    %cst_7 = arith.constant dense<0.000000e+00> : vector<64x32xf32>
    %32 = tpu.matmul %29, %31, %cst_7 {dimension_numbers = #tpu.dot_dimension_numbers<[1], [0], [0], [1], [0, 0, 1, 1], [], []>} : vector<64x288xf32>, vector<288x32xf32>, vector<64x32xf32> -> vector<64x32xf32>
    %c0_8 = arith.constant 0 : index
    %c0_9 = arith.constant 0 : index
    %c0_10 = arith.constant 0 : index
    %33 = vector.load %arg3[%c0_8, %c0_9, %c0_10] : memref<4x1x32xf32, #tpu.memory_space<vmem>>, vector<1x1x32xf32>
    %34 = vector.shape_cast %33 : vector<1x1x32xf32> to vector<1x32xf32>
    %35 = vector.broadcast %34 : vector<1x32xf32> to vector<64x32xf32>
    %36 = arith.addf %32, %35 : vector<64x32xf32>
    %37 = vector.shape_cast %36 : vector<64x32xf32> to vector<8x8x32xf32>
    %cst_11 = arith.constant 0.000000e+00 : f32
    %38 = vector.broadcast %cst_11 : f32 to vector<8x8x32xf32>
    %39 = arith.maximumf %37, %38 : vector<8x8x32xf32>
    %40 = vector.extract_strided_slice %39 {offsets = [0, 0, 0], sizes = [7, 8, 32], strides = [1, 1, 1]} : vector<8x8x32xf32> to vector<7x8x32xf32>
    %41 = tpu.concatenate %2, %40 in 0 : vector<1x8x32xf32>, vector<7x8x32xf32> -> vector<8x8x32xf32>
    %42 = vector.extract_strided_slice %41 {offsets = [0, 0, 0], sizes = [8, 7, 32], strides = [1, 1, 1]} : vector<8x8x32xf32> to vector<8x7x32xf32>
    %43 = tpu.concatenate %3, %42 in 1 : vector<8x1x32xf32>, vector<8x7x32xf32> -> vector<8x8x32xf32>
    %44 = vector.extract_strided_slice %39 {offsets = [0, 0, 0], sizes = [7, 8, 32], strides = [1, 1, 1]} : vector<8x8x32xf32> to vector<7x8x32xf32>
    %45 = tpu.concatenate %2, %44 in 0 : vector<1x8x32xf32>, vector<7x8x32xf32> -> vector<8x8x32xf32>
    %46 = vector.extract_strided_slice %39 {offsets = [0, 0, 0], sizes = [7, 8, 32], strides = [1, 1, 1]} : vector<8x8x32xf32> to vector<7x8x32xf32>
    %47 = tpu.concatenate %2, %46 in 0 : vector<1x8x32xf32>, vector<7x8x32xf32> -> vector<8x8x32xf32>
    %48 = vector.extract_strided_slice %47 {offsets = [0, 1, 0], sizes = [8, 7, 32], strides = [1, 1, 1]} : vector<8x8x32xf32> to vector<8x7x32xf32>
    %49 = tpu.concatenate %48, %3 in 1 : vector<8x7x32xf32>, vector<8x1x32xf32> -> vector<8x8x32xf32>
    %50 = vector.extract_strided_slice %39 {offsets = [0, 0, 0], sizes = [8, 7, 32], strides = [1, 1, 1]} : vector<8x8x32xf32> to vector<8x7x32xf32>
    %51 = tpu.concatenate %3, %50 in 1 : vector<8x1x32xf32>, vector<8x7x32xf32> -> vector<8x8x32xf32>
    %52 = vector.extract_strided_slice %39 {offsets = [0, 1, 0], sizes = [8, 7, 32], strides = [1, 1, 1]} : vector<8x8x32xf32> to vector<8x7x32xf32>
    %53 = tpu.concatenate %52, %3 in 1 : vector<8x7x32xf32>, vector<8x1x32xf32> -> vector<8x8x32xf32>
    %54 = vector.extract_strided_slice %39 {offsets = [1, 0, 0], sizes = [7, 8, 32], strides = [1, 1, 1]} : vector<8x8x32xf32> to vector<7x8x32xf32>
    %55 = tpu.concatenate %54, %2 in 0 : vector<7x8x32xf32>, vector<1x8x32xf32> -> vector<8x8x32xf32>
    %56 = vector.extract_strided_slice %55 {offsets = [0, 0, 0], sizes = [8, 7, 32], strides = [1, 1, 1]} : vector<8x8x32xf32> to vector<8x7x32xf32>
    %57 = tpu.concatenate %3, %56 in 1 : vector<8x1x32xf32>, vector<8x7x32xf32> -> vector<8x8x32xf32>
    %58 = vector.extract_strided_slice %39 {offsets = [1, 0, 0], sizes = [7, 8, 32], strides = [1, 1, 1]} : vector<8x8x32xf32> to vector<7x8x32xf32>
    %59 = tpu.concatenate %58, %2 in 0 : vector<7x8x32xf32>, vector<1x8x32xf32> -> vector<8x8x32xf32>
    %60 = vector.extract_strided_slice %39 {offsets = [1, 0, 0], sizes = [7, 8, 32], strides = [1, 1, 1]} : vector<8x8x32xf32> to vector<7x8x32xf32>
    %61 = tpu.concatenate %60, %2 in 0 : vector<7x8x32xf32>, vector<1x8x32xf32> -> vector<8x8x32xf32>
    %62 = vector.extract_strided_slice %61 {offsets = [0, 1, 0], sizes = [8, 7, 32], strides = [1, 1, 1]} : vector<8x8x32xf32> to vector<8x7x32xf32>
    %63 = tpu.concatenate %62, %3 in 1 : vector<8x7x32xf32>, vector<8x1x32xf32> -> vector<8x8x32xf32>
    %64 = tpu.concatenate %43, %45, %49, %51, %39, %53, %57, %59, %63 in 2 : vector<8x8x32xf32>, vector<8x8x32xf32>, vector<8x8x32xf32>, vector<8x8x32xf32>, vector<8x8x32xf32>, vector<8x8x32xf32>, vector<8x8x32xf32>, vector<8x8x32xf32>, vector<8x8x32xf32> -> vector<8x8x288xf32>
    %65 = vector.shape_cast %64 : vector<8x8x288xf32> to vector<64x288xf32>
    %c1 = arith.constant 1 : index
    %c0_12 = arith.constant 0 : index
    %c0_13 = arith.constant 0 : index
    %66 = vector.load %arg2[%c1, %c0_12, %c0_13] : memref<4x288x32xf32, #tpu.memory_space<vmem>>, vector<1x288x32xf32>
    %67 = vector.shape_cast %66 : vector<1x288x32xf32> to vector<288x32xf32>
    %cst_14 = arith.constant dense<0.000000e+00> : vector<64x32xf32>
    %68 = tpu.matmul %65, %67, %cst_14 {dimension_numbers = #tpu.dot_dimension_numbers<[1], [0], [0], [1], [0, 0, 1, 1], [], []>} : vector<64x288xf32>, vector<288x32xf32>, vector<64x32xf32> -> vector<64x32xf32>
    %c1_15 = arith.constant 1 : index
    %c0_16 = arith.constant 0 : index
    %c0_17 = arith.constant 0 : index
    %69 = vector.load %arg3[%c1_15, %c0_16, %c0_17] : memref<4x1x32xf32, #tpu.memory_space<vmem>>, vector<1x1x32xf32>
    %70 = vector.shape_cast %69 : vector<1x1x32xf32> to vector<1x32xf32>
    %71 = vector.broadcast %70 : vector<1x32xf32> to vector<64x32xf32>
    %72 = arith.addf %68, %71 : vector<64x32xf32>
    %73 = vector.shape_cast %72 : vector<64x32xf32> to vector<8x8x32xf32>
    %74 = arith.addf %73, %1 : vector<8x8x32xf32>
    %cst_18 = arith.constant 0.000000e+00 : f32
    %75 = vector.broadcast %cst_18 : f32 to vector<8x8x32xf32>
    %76 = arith.maximumf %74, %75 : vector<8x8x32xf32>
    %77 = vector.extract_strided_slice %76 {offsets = [0, 0, 0], sizes = [7, 8, 32], strides = [1, 1, 1]} : vector<8x8x32xf32> to vector<7x8x32xf32>
    %78 = tpu.concatenate %2, %77 in 0 : vector<1x8x32xf32>, vector<7x8x32xf32> -> vector<8x8x32xf32>
    %79 = vector.extract_strided_slice %78 {offsets = [0, 0, 0], sizes = [8, 7, 32], strides = [1, 1, 1]} : vector<8x8x32xf32> to vector<8x7x32xf32>
    %80 = tpu.concatenate %3, %79 in 1 : vector<8x1x32xf32>, vector<8x7x32xf32> -> vector<8x8x32xf32>
    %81 = vector.extract_strided_slice %76 {offsets = [0, 0, 0], sizes = [7, 8, 32], strides = [1, 1, 1]} : vector<8x8x32xf32> to vector<7x8x32xf32>
    %82 = tpu.concatenate %2, %81 in 0 : vector<1x8x32xf32>, vector<7x8x32xf32> -> vector<8x8x32xf32>
    %83 = vector.extract_strided_slice %76 {offsets = [0, 0, 0], sizes = [7, 8, 32], strides = [1, 1, 1]} : vector<8x8x32xf32> to vector<7x8x32xf32>
    %84 = tpu.concatenate %2, %83 in 0 : vector<1x8x32xf32>, vector<7x8x32xf32> -> vector<8x8x32xf32>
    %85 = vector.extract_strided_slice %84 {offsets = [0, 1, 0], sizes = [8, 7, 32], strides = [1, 1, 1]} : vector<8x8x32xf32> to vector<8x7x32xf32>
    %86 = tpu.concatenate %85, %3 in 1 : vector<8x7x32xf32>, vector<8x1x32xf32> -> vector<8x8x32xf32>
    %87 = vector.extract_strided_slice %76 {offsets = [0, 0, 0], sizes = [8, 7, 32], strides = [1, 1, 1]} : vector<8x8x32xf32> to vector<8x7x32xf32>
    %88 = tpu.concatenate %3, %87 in 1 : vector<8x1x32xf32>, vector<8x7x32xf32> -> vector<8x8x32xf32>
    %89 = vector.extract_strided_slice %76 {offsets = [0, 1, 0], sizes = [8, 7, 32], strides = [1, 1, 1]} : vector<8x8x32xf32> to vector<8x7x32xf32>
    %90 = tpu.concatenate %89, %3 in 1 : vector<8x7x32xf32>, vector<8x1x32xf32> -> vector<8x8x32xf32>
    %91 = vector.extract_strided_slice %76 {offsets = [1, 0, 0], sizes = [7, 8, 32], strides = [1, 1, 1]} : vector<8x8x32xf32> to vector<7x8x32xf32>
    %92 = tpu.concatenate %91, %2 in 0 : vector<7x8x32xf32>, vector<1x8x32xf32> -> vector<8x8x32xf32>
    %93 = vector.extract_strided_slice %92 {offsets = [0, 0, 0], sizes = [8, 7, 32], strides = [1, 1, 1]} : vector<8x8x32xf32> to vector<8x7x32xf32>
    %94 = tpu.concatenate %3, %93 in 1 : vector<8x1x32xf32>, vector<8x7x32xf32> -> vector<8x8x32xf32>
    %95 = vector.extract_strided_slice %76 {offsets = [1, 0, 0], sizes = [7, 8, 32], strides = [1, 1, 1]} : vector<8x8x32xf32> to vector<7x8x32xf32>
    %96 = tpu.concatenate %95, %2 in 0 : vector<7x8x32xf32>, vector<1x8x32xf32> -> vector<8x8x32xf32>
    %97 = vector.extract_strided_slice %76 {offsets = [1, 0, 0], sizes = [7, 8, 32], strides = [1, 1, 1]} : vector<8x8x32xf32> to vector<7x8x32xf32>
    %98 = tpu.concatenate %97, %2 in 0 : vector<7x8x32xf32>, vector<1x8x32xf32> -> vector<8x8x32xf32>
    %99 = vector.extract_strided_slice %98 {offsets = [0, 1, 0], sizes = [8, 7, 32], strides = [1, 1, 1]} : vector<8x8x32xf32> to vector<8x7x32xf32>
    %100 = tpu.concatenate %99, %3 in 1 : vector<8x7x32xf32>, vector<8x1x32xf32> -> vector<8x8x32xf32>
    %101 = tpu.concatenate %80, %82, %86, %88, %76, %90, %94, %96, %100 in 2 : vector<8x8x32xf32>, vector<8x8x32xf32>, vector<8x8x32xf32>, vector<8x8x32xf32>, vector<8x8x32xf32>, vector<8x8x32xf32>, vector<8x8x32xf32>, vector<8x8x32xf32>, vector<8x8x32xf32> -> vector<8x8x288xf32>
    %102 = vector.shape_cast %101 : vector<8x8x288xf32> to vector<64x288xf32>
    %c2 = arith.constant 2 : index
    %c0_19 = arith.constant 0 : index
    %c0_20 = arith.constant 0 : index
    %103 = vector.load %arg2[%c2, %c0_19, %c0_20] : memref<4x288x32xf32, #tpu.memory_space<vmem>>, vector<1x288x32xf32>
    %104 = vector.shape_cast %103 : vector<1x288x32xf32> to vector<288x32xf32>
    %cst_21 = arith.constant dense<0.000000e+00> : vector<64x32xf32>
    %105 = tpu.matmul %102, %104, %cst_21 {dimension_numbers = #tpu.dot_dimension_numbers<[1], [0], [0], [1], [0, 0, 1, 1], [], []>} : vector<64x288xf32>, vector<288x32xf32>, vector<64x32xf32> -> vector<64x32xf32>
    %c2_22 = arith.constant 2 : index
    %c0_23 = arith.constant 0 : index
    %c0_24 = arith.constant 0 : index
    %106 = vector.load %arg3[%c2_22, %c0_23, %c0_24] : memref<4x1x32xf32, #tpu.memory_space<vmem>>, vector<1x1x32xf32>
    %107 = vector.shape_cast %106 : vector<1x1x32xf32> to vector<1x32xf32>
    %108 = vector.broadcast %107 : vector<1x32xf32> to vector<64x32xf32>
    %109 = arith.addf %105, %108 : vector<64x32xf32>
    %110 = vector.shape_cast %109 : vector<64x32xf32> to vector<8x8x32xf32>
    %cst_25 = arith.constant 0.000000e+00 : f32
    %111 = vector.broadcast %cst_25 : f32 to vector<8x8x32xf32>
    %112 = arith.maximumf %110, %111 : vector<8x8x32xf32>
    %113 = vector.extract_strided_slice %112 {offsets = [0, 0, 0], sizes = [7, 8, 32], strides = [1, 1, 1]} : vector<8x8x32xf32> to vector<7x8x32xf32>
    %114 = tpu.concatenate %2, %113 in 0 : vector<1x8x32xf32>, vector<7x8x32xf32> -> vector<8x8x32xf32>
    %115 = vector.extract_strided_slice %114 {offsets = [0, 0, 0], sizes = [8, 7, 32], strides = [1, 1, 1]} : vector<8x8x32xf32> to vector<8x7x32xf32>
    %116 = tpu.concatenate %3, %115 in 1 : vector<8x1x32xf32>, vector<8x7x32xf32> -> vector<8x8x32xf32>
    %117 = vector.extract_strided_slice %112 {offsets = [0, 0, 0], sizes = [7, 8, 32], strides = [1, 1, 1]} : vector<8x8x32xf32> to vector<7x8x32xf32>
    %118 = tpu.concatenate %2, %117 in 0 : vector<1x8x32xf32>, vector<7x8x32xf32> -> vector<8x8x32xf32>
    %119 = vector.extract_strided_slice %112 {offsets = [0, 0, 0], sizes = [7, 8, 32], strides = [1, 1, 1]} : vector<8x8x32xf32> to vector<7x8x32xf32>
    %120 = tpu.concatenate %2, %119 in 0 : vector<1x8x32xf32>, vector<7x8x32xf32> -> vector<8x8x32xf32>
    %121 = vector.extract_strided_slice %120 {offsets = [0, 1, 0], sizes = [8, 7, 32], strides = [1, 1, 1]} : vector<8x8x32xf32> to vector<8x7x32xf32>
    %122 = tpu.concatenate %121, %3 in 1 : vector<8x7x32xf32>, vector<8x1x32xf32> -> vector<8x8x32xf32>
    %123 = vector.extract_strided_slice %112 {offsets = [0, 0, 0], sizes = [8, 7, 32], strides = [1, 1, 1]} : vector<8x8x32xf32> to vector<8x7x32xf32>
    %124 = tpu.concatenate %3, %123 in 1 : vector<8x1x32xf32>, vector<8x7x32xf32> -> vector<8x8x32xf32>
    %125 = vector.extract_strided_slice %112 {offsets = [0, 1, 0], sizes = [8, 7, 32], strides = [1, 1, 1]} : vector<8x8x32xf32> to vector<8x7x32xf32>
    %126 = tpu.concatenate %125, %3 in 1 : vector<8x7x32xf32>, vector<8x1x32xf32> -> vector<8x8x32xf32>
    %127 = vector.extract_strided_slice %112 {offsets = [1, 0, 0], sizes = [7, 8, 32], strides = [1, 1, 1]} : vector<8x8x32xf32> to vector<7x8x32xf32>
    %128 = tpu.concatenate %127, %2 in 0 : vector<7x8x32xf32>, vector<1x8x32xf32> -> vector<8x8x32xf32>
    %129 = vector.extract_strided_slice %128 {offsets = [0, 0, 0], sizes = [8, 7, 32], strides = [1, 1, 1]} : vector<8x8x32xf32> to vector<8x7x32xf32>
    %130 = tpu.concatenate %3, %129 in 1 : vector<8x1x32xf32>, vector<8x7x32xf32> -> vector<8x8x32xf32>
    %131 = vector.extract_strided_slice %112 {offsets = [1, 0, 0], sizes = [7, 8, 32], strides = [1, 1, 1]} : vector<8x8x32xf32> to vector<7x8x32xf32>
    %132 = tpu.concatenate %131, %2 in 0 : vector<7x8x32xf32>, vector<1x8x32xf32> -> vector<8x8x32xf32>
    %133 = vector.extract_strided_slice %112 {offsets = [1, 0, 0], sizes = [7, 8, 32], strides = [1, 1, 1]} : vector<8x8x32xf32> to vector<7x8x32xf32>
    %134 = tpu.concatenate %133, %2 in 0 : vector<7x8x32xf32>, vector<1x8x32xf32> -> vector<8x8x32xf32>
    %135 = vector.extract_strided_slice %134 {offsets = [0, 1, 0], sizes = [8, 7, 32], strides = [1, 1, 1]} : vector<8x8x32xf32> to vector<8x7x32xf32>
    %136 = tpu.concatenate %135, %3 in 1 : vector<8x7x32xf32>, vector<8x1x32xf32> -> vector<8x8x32xf32>
    %137 = tpu.concatenate %116, %118, %122, %124, %112, %126, %130, %132, %136 in 2 : vector<8x8x32xf32>, vector<8x8x32xf32>, vector<8x8x32xf32>, vector<8x8x32xf32>, vector<8x8x32xf32>, vector<8x8x32xf32>, vector<8x8x32xf32>, vector<8x8x32xf32>, vector<8x8x32xf32> -> vector<8x8x288xf32>
    %138 = vector.shape_cast %137 : vector<8x8x288xf32> to vector<64x288xf32>
    %c3 = arith.constant 3 : index
    %c0_26 = arith.constant 0 : index
    %c0_27 = arith.constant 0 : index
    %139 = vector.load %arg2[%c3, %c0_26, %c0_27] : memref<4x288x32xf32, #tpu.memory_space<vmem>>, vector<1x288x32xf32>
    %140 = vector.shape_cast %139 : vector<1x288x32xf32> to vector<288x32xf32>
    %cst_28 = arith.constant dense<0.000000e+00> : vector<64x32xf32>
    %141 = tpu.matmul %138, %140, %cst_28 {dimension_numbers = #tpu.dot_dimension_numbers<[1], [0], [0], [1], [0, 0, 1, 1], [], []>} : vector<64x288xf32>, vector<288x32xf32>, vector<64x32xf32> -> vector<64x32xf32>
    %c3_29 = arith.constant 3 : index
    %c0_30 = arith.constant 0 : index
    %c0_31 = arith.constant 0 : index
    %142 = vector.load %arg3[%c3_29, %c0_30, %c0_31] : memref<4x1x32xf32, #tpu.memory_space<vmem>>, vector<1x1x32xf32>
    %143 = vector.shape_cast %142 : vector<1x1x32xf32> to vector<1x32xf32>
    %144 = vector.broadcast %143 : vector<1x32xf32> to vector<64x32xf32>
    %145 = arith.addf %141, %144 : vector<64x32xf32>
    %146 = vector.shape_cast %145 : vector<64x32xf32> to vector<8x8x32xf32>
    %147 = arith.addf %146, %76 : vector<8x8x32xf32>
    %cst_32 = arith.constant 0.000000e+00 : f32
    %148 = vector.broadcast %cst_32 : f32 to vector<8x8x32xf32>
    %149 = arith.maximumf %147, %148 : vector<8x8x32xf32>
    %c0_33 = arith.constant 0 : index
    %c0_34 = arith.constant 0 : index
    %c0_35 = arith.constant 0 : index
    %c0_36 = arith.constant 0 : index
    %150 = vector.load %arg4[%c0_33, %c0_34, %c0_35, %c0_36] : memref<1x8x8x32xf32, #tpu.memory_space<vmem>>, vector<1x8x8x32xf32>
    %151 = vector.shape_cast %150 : vector<1x8x8x32xf32> to vector<8x8x32xf32>
    %152 = vector.shape_cast %149 : vector<8x8x32xf32> to vector<1x8x8x32xf32>
    tpu.vector_store %arg4[%c0_33, %c0_34, %c0_35, %c0_36], %152 {strides = array<i32>} : memref<1x8x8x32xf32, #tpu.memory_space<vmem>>, vector<1x8x8x32xf32>,
    return
  }
  func.func @transform_0(%arg0: i32) -> (i32, i32, i32, i32) {
    %c0_i32 = arith.constant 0 : i32
    %c0_i32_0 = arith.constant 0 : i32
    %c0_i32_1 = arith.constant 0 : i32
    %c0_i32_2 = arith.constant 0 : i32
    return %arg0, %c0_i32, %c0_i32_0, %c0_i32_1 : i32, i32, i32, i32
  }
  func.func @transform_1(%arg0: i32) -> (i32, i32, i32) {
    %c0_i32 = arith.constant 0 : i32
    %c0_i32_0 = arith.constant 0 : i32
    %c0_i32_1 = arith.constant 0 : i32
    %c0_i32_2 = arith.constant 0 : i32
    return %c0_i32, %c0_i32_0, %c0_i32_1 : i32, i32, i32
  }
  func.func @transform_2(%arg0: i32) -> (i32, i32, i32) {
    %c0_i32 = arith.constant 0 : i32
    %c0_i32_0 = arith.constant 0 : i32
    %c0_i32_1 = arith.constant 0 : i32
    %c0_i32_2 = arith.constant 0 : i32
    return %c0_i32, %c0_i32_0, %c0_i32_1 : i32, i32, i32
  }
  func.func @transform_3(%arg0: i32) -> (i32, i32, i32, i32) {
    %c0_i32 = arith.constant 0 : i32
    %c0_i32_0 = arith.constant 0 : i32
    %c0_i32_1 = arith.constant 0 : i32
    %c0_i32_2 = arith.constant 0 : i32
    return %arg0, %c0_i32, %c0_i32_0, %c0_i32_1 : i32, i32, i32, i32
  }
}

</mosaic_0001>

<bundles_post_ra>
// kernel: go_resnet_forward.1
= control target key start
LH: loop header
LB: loop body
LE: loop exit
PB: predicated region body
PF: predicated region fallthrough
CT: control target
= control target key end

     0   :  { %8 = vsyncpa [#allocation3], 0  ;;  %s5140_s0 = inlined_call_operand.vmem [shape: f32[2,8,8,32], index: 0, kind: input, shape index: {}]   ;;  %s5141_s1 = inlined_call_operand.vmem [shape: f32[4,288,32], index: 1, kind: input, shape index: {}]   ;;  %s5142_s2 = inlined_call_operand.vmem [shape: f32[4,1,32], index: 2, kind: input, shape index: {}]   ;;  %s5143_s3 = inlined_call_operand.hbm [shape: f32[2,8,8,32], index: 3, kind: output, shape index: {}]  }
   0x1   :  { %10 = vsyncpa [#allocation3 + $0x1], 0  ;;  %s3650_s12 = smov 0   ;;  %s3652_s13 = smov 0  }
   0x2   :  { %s3654_s14 = smov 0   ;;  %s3656_s15 = smov 0  }
   0x3 LB: > { %s3671_s16 = sadd.s32 4294967295, %s3621_s15   ;;  %s2413_s17 = sadd.s32 4294967294, %s3621_s15   ;;  %s3621_s15 = sphi %s3656_s15, %s5149_s15   ;;  %s3617_s14 = sphi %s3654_s14, %s5148_s14   ;;  %s3613_s13 = sphi %s3652_s13, %s5147_s13   ;;  %s3609_s12 = sphi %s3650_s12, %s5146_s12  }
   0x4   : > { %s3675_s18 = sadd.s32 1, %s3621_s15   ;;  %s91_s19 = sadd.s32 1, %s3617_s14 }
   0x5   : > { %s88_s20 = ssub.s32 %s3621_s15, %s3675_s18  ;;  %p101_p0 = scmp.ne.s32.totalorder %s3617_s14, %s3613_s13 }
   0x6   : > { %p89_p1 = scmp.eq.s32.totalorder %s88_s20, 0  ;;  %p102_p2 = scmp.eq.s32.totalorder %s3671_s16, 1 }
   0x7   : > { %p107_p3 = scmp.ne.s32.totalorder %s3613_s13, %s3609_s12  ;;  %p108_p4 = scmp.eq.s32.totalorder %s2413_s17, 1 }
   0x8   : > { %s3686_s21 = scalar_select %p89_p1, %s3617_s14, %s91_s19  }
   0x9   : > { %p3688_p5 = por %p102_p2, %p101_p0  ;;  %p3692_p6 = por %p108_p4, %p107_p3 }
   0xa   : > { %p2416_p7 = scmp.ge.s32.totalorder %s3621_s15, 1  ;;  %p140_p8 = scmp.lt.s32.totalorder %s3621_s15, 3 }
   0xc   : > { %p141_p9 = pnand %p2416_p7, %p140_p8 }
   0xd   : > { %p164_p10 = scmp.lt.s32.totalorder (!%p141_p9), %s3671_s16, 1  ;;  %v471_v0 = vld [vmem:[%s5141_s1 + $0x80] sm:$0xff] (!%p141_p9)  ;;  %v472_v1 = vld [vmem:[%s5141_s1 + $0x88] sm:$0xff] (!%p141_p9)  ;;  %v473_v5 = vld [vmem:[%s5141_s1 + $0x90] sm:$0xff] (!%p141_p9)  ;;  %v3623_v12 = vmov (!%p141_p9), 0.0   ;;  %vm201_vm0 = vcmask (!%p141_p9), 1040384  }
   0xe   : > { %144 = sbr.rel (%p141_p9) target bundleno = 1538 (0x602), region = 32  ;;  %v455_v2 = vld [vmem:[%s5141_s1] sm:$0xff] (!%p141_p9)  ;;  %v2926_v3 = vpack.c.bf16 (!%p141_p9), %v472_v1, %v471_v0  ;;  %v456_v4 = vld [vmem:[%s5141_s1 + $0x8] sm:$0xff] (!%p141_p9)  ;;  %v474_v6 = vld [vmem:[%s5141_s1 + $0x98] sm:$0xff] (!%p141_p9)  ;;  %v210_v13 = vrot.slane (!%p141_p9), %v3623_v12, 1  ;;  %vm226_vm1 = vcmask (!%p141_p9), 1046528  }
   0xf   : > { %v2928_v7 = vpack.c.bf16 (!%p141_p9), %v456_v4, %v455_v2  ;;  %v2930_v8 = vpack.c.bf16 (!%p141_p9), %v474_v6, %v473_v5  ;;  %v457_v9 = vld [vmem:[%s5141_s1 + $0x10] sm:$0xff] (!%p141_p9)  ;;  %v458_v10 = vld [vmem:[%s5141_s1 + $0x18] sm:$0xff] (!%p141_p9)  ;;  %v475_v11 = vld [vmem:[%s5141_s1 + $0xa0] sm:$0xff] (!%p141_p9)  ;;  %s3624_s17 = smov (!%p141_p9), 32   ;;  %s3625_s19 = smov (!%p141_p9), 96   ;;  %vm404_vm2 = vcmask (!%p141_p9), 261120  }
  0x10   : > { %2927 = vmatprep.subr.bf16.mxu0 (!%p141_p9), %v2926_v3  ;;  %v476_v14 = vld [vmem:[%s5141_s1 + $0xa8] sm:$0xff] (!%p141_p9)  ;;  %v2932_v15 = vpack.c.bf16 (!%p141_p9), %v458_v10, %v457_v9  ;;  %v459_v16 = vld [vmem:[%s5141_s1 + $0x20] sm:$0xff] (!%p141_p9)  ;;  %v477_v25 = vld [vmem:[%s5141_s1 + $0xb0] sm:$0xff] (!%p141_p9)  ;;  %v3761_v27 = vsel (!%p141_p9), %vm226_vm1, %v210_v13, 0.0  ;;  %s3626_s20 = smov (!%p141_p9), 64   ;;  %vm413_vm3 = vcmask (!%p141_p9), 523264  }
  0x11   : > { %2929 = vmatpush3.bf16.msra.mxu0 (!%p141_p9), %v2928_v7  ;;  %v460_v17 = vld [vmem:[%s5141_s1 + $0x28] sm:$0xff] (!%p141_p9)  ;;  %v2934_v21 = vpack.c.bf16 (!%p141_p9), %v476_v14, %v475_v11  ;;  %v478_v26 = vld [vmem:[%s5141_s1 + $0xb8] sm:$0xff] (!%p141_p9)  ;;  %v461_v50 = vld [vmem:[%s5141_s1 + $0x30] sm:$0xff] (!%p141_p9)  ;;  %vm422_vm4 = vcmask (!%p141_p9), 785408   ;;  %s2573_s8 = sshll.u32 (!%p141_p9), %s3671_s16, 10  ;;  %s3627_s26 = smov (!%p141_p9), [#allocation2]  }
  0x12   : > { %2931 = vmatprep.subr.bf16.mxu0 (!%p141_p9), %v2930_v8  ;;  %v2936_v29 = vpack.c.bf16 (!%p141_p9), %v460_v17, %v459_v16  ;;  %v2938_v37 = vpack.c.bf16 (!%p141_p9), %v478_v26, %v477_v25  ;;  %v462_v51 = vld [vmem:[%s5141_s1 + $0x38] sm:$0xff] (!%p141_p9)  ;;  %v479_v52 = vld [vmem:[%s5141_s1 + $0xc0] sm:$0xff] (!%p141_p9)  ;;  %v480_v53 = vld [vmem:[%s5141_s1 + $0xc8] sm:$0xff] (!%p141_p9)  ;;  %s5091_s24 = scalar_lea.hbm (!%p141_p9), %s5143_s3, %s2573_s8  ;;  %s3563_s27 = sshll.u32 (!%p141_p9), %s3627_s26, 4  ;;  %s3564_s27 = int_to_ptr.vmem [resolvable:$false] %s3563_s27 }
  0x13   : > { %v463_v56 = vld [vmem:[%s5141_s1 + $0x40] sm:$0xff] (!%p141_p9)  ;;  %v464_v57 = vld [vmem:[%s5141_s1 + $0x48] sm:$0xff] (!%p141_p9)  ;;  %v2940_v60 = vpack.c.bf16 (!%p141_p9), %v462_v51, %v461_v50  ;;  %v2942_v61 = vpack.c.bf16 (!%p141_p9), %v480_v53, %v479_v52  ;;  %v481_v63 = vld [vmem:[%s5141_s1 + $0xd0] sm:$0xff] (!%p141_p9)  ;;  %s3565_s28 = scalar_lea.vmem (!%p141_p9), %s3564_s27, 2048 }
  0x14   : > { %v482_v0 = vld [vmem:[%s5141_s1 + $0xd8] sm:$0xff] (!%p141_p9)  ;;  %v2944_v1 = vpack.c.bf16 (!%p141_p9), %v464_v57, %v463_v56  ;;  %v465_v4 = vld [vmem:[%s5141_s1 + $0x50] sm:$0xff] (!%p141_p9)  ;;  %v483_v10 = vld [vmem:[%s5141_s1 + $0xe0] sm:$0xff] (!%p141_p9) }
  0x15   : > { %s165_s30 = scalar_select %p164_p10, %s3671_s16, 1  ;;  %2933 = vmatpush3.bf16.msra.mxu0 %v2932_v15  ;;  %v466_v5 = vld [vmem:[%s5141_s1 + $0x58] sm:$0xff]  ;;  %v2946_v9 = vpack.c.bf16 %v482_v0, %v481_v63  ;;  %v484_v11 = vld [vmem:[%s5141_s1 + $0xe8] sm:$0xff]  ;;  %v467_v16 = vld [vmem:[%s5141_s1 + $0x60] sm:$0xff] }
  0x16   : > { %2935 = vmatprep.subr.bf16.mxu0 %v2934_v21  ;;  %v2948_v13 = vpack.c.bf16 %v466_v5, %v465_v4  ;;  %v468_v17 = vld [vmem:[%s5141_s1 + $0x68] sm:$0xff]  ;;  %v485_v26 = vld [vmem:[%s5141_s1 + $0xf0] sm:$0xff] }
  0x17   : > { %s2572_s25 = sshll.u32 %s165_s30, 6 }
  0x18   : > { %s3734_s4 = scalar_lea.vmem %s5140_s0, %s2572_s25 }
  0x19   : > { %v3743_v18 = vld [vmem:[%s3734_s4] sm:$0xff]  ;;  %v3746_v19 = vld [vmem:[%s3734_s4 + $0x10] sm:$0xff]  ;;  %v3749_v20 = vld [vmem:[%s3734_s4 + $0x8] sm:$0xff]  ;;  %2937 = vmatpush3.bf16.msra.mxu0 %v2936_v29  ;;  %v2952_v29 = vpack.c.bf16 %v468_v17, %v467_v16 }
  0x1a   : > { %v211_v22 = vrot.slane %v3743_v18, 1  ;;  %v186_v23 = vrot.slane %v3743_v18, 7  ;;  %v187_v24 = vrot.slane %v3749_v20, 7  ;;  %v212_v28 = vrot.slane %v3749_v20, 1  ;;  %v3776_v36 = vld [vmem:[%s3734_s4 + $0x18] sm:$0xff]  ;;  %2939 = vmatprep.subr.bf16.mxu0 %v2938_v37  ;;  %v3805_v49 = vld [vmem:[%s3734_s4 + $0x20] sm:$0xff] }
  0x1b   : > { %v188_v30 = vrot.slane %v3746_v19, 7  ;;  %v213_v42 = vrot.slane %v3746_v19, 1  ;;  %v189_v43 = vrot.slane %v3776_v36, 7  ;;  %v214_v48 = vrot.slane %v3776_v36, 1  ;;  %v3836_v62 = vld [vmem:[%s3734_s4 + $0x28] sm:$0xff]  ;;  %v3887_v25 = vld [vmem:[%s3734_s4 + $0x30] sm:$0xff] }
  0x1c   : > { %v228_v31 = vsel %vm226_vm1, %v211_v22, 0.0  ;;  %v3767_v32 = vsel %vm201_vm0, 0.0, %v186_v23  ;;  %v3770_v33 = vsel %vm201_vm0, 0.0, %v187_v24  ;;  %v3779_v38 = vsel %vm226_vm1, %v212_v28, 0.0  ;;  %v486_v28 = vld [vmem:[%s5141_s1 + $0xf8] sm:$0xff] }
  0x1d   : > { %v3131_v34 = vpack.i.bf16 %v3623_v12, %v228_v31  ;;  %v3141_v35 = vpack.i.bf16 %v3767_v32, %v3749_v20  ;;  %v3136_v39 = vpack.i.bf16 %v3761_v27, %v3770_v33  ;;  %v3146_v40 = vpack.i.bf16 %v3743_v18, %v3779_v38  ;;  %2941 = vmatpush3.bf16.msra.mxu0 %v2940_v60 }
  0x1e   : > { %v3788_v41 = vsel %vm201_vm0, 0.0, %v188_v30  ;;  %v3156_v45 = vpack.i.bf16 %v3770_v33, %v3746_v19  ;;  %v3798_v46 = vsel %vm226_vm1, %v213_v42, 0.0  ;;  %v3801_v47 = vsel %vm201_vm0, 0.0, %v189_v43  ;;  %2943 = vmatprep.subr.bf16.mxu0 %v2942_v61  ;;  %v3912_v42 = vld [vmem:[%s3734_s4 + $0x38] sm:$0xff]  ;;  %v487_v43 = vld [vmem:[%s5141_s1 + $0x100] sm:$0xff] }
  0x1f   : > { %3132 = vrot.lane.b32.xlu0 %v3131_v34, %s3624_s17  ;;  %3142 = vrot.lane.b32.xlu1 %v3141_v35, %s3625_s19  ;;  %v3151_v44 = vpack.i.bf16 %v228_v31, %v3788_v41  ;;  %v3161_v54 = vpack.i.bf16 %v3749_v20, %v3798_v46  ;;  %v3166_v55 = vpack.i.bf16 %v3779_v38, %v3801_v47  ;;  %v3832_v58 = vsel %vm226_vm1, %v214_v48, 0.0  ;;  %v469_v34 = vld [vmem:[%s5141_s1 + $0x70] sm:$0xff]  ;;  %v470_v35 = vld [vmem:[%s5141_s1 + $0x78] sm:$0xff] }
  0x20   : > { %v190_v59 = vrot.slane %v3805_v49, 7  ;;  %v3171_v2 = vpack.i.bf16 %v3788_v41, %v3776_v36  ;;  %v3176_v3 = vpack.i.bf16 %v3746_v19, %v3832_v58  ;;  %v215_v7 = vrot.slane %v3805_v49, 1 }
  0x21   : > { %v191_v8 = vrot.slane %v3836_v62, 7  ;;  %2945 = vmatpush3.bf16.msra.mxu0 %v2944_v1  ;;  %v3186_v15 = vpack.i.bf16 %v3801_v47, %v3805_v49  ;;  %v216_v23 = vrot.slane %v3836_v62, 1  ;;  %v2950_v24 = vpack.c.bf16 %v484_v11, %v483_v10 }
  0x22   : > { %v3857_v6 = vsel %vm201_vm0, 0.0, %v190_v59  ;;  %v3880_v21 = vsel %vm226_vm1, %v215_v7, 0.0  ;;  %2947 = vmatprep.subr.bf16.mxu0 %v2946_v9  ;;  %v217_v52 = vrot.slane %v3887_v25, 1  ;;  %v236_v53 = vrot.slane %v3912_v42, 7 }
  0x23   : > { %3137 = vrot.lane.b32.xlu0 %v3136_v39, %s3626_s20  ;;  %3147 = vrot.lane.b32.xlu1 %v3146_v40, %s3624_s17  ;;  %v3181_v14 = vpack.i.bf16 %v3798_v46, %v3857_v6  ;;  %v3883_v22 = vsel %vm201_vm0, 0.0, %v191_v8  ;;  %v3191_v30 = vpack.i.bf16 %v3776_v36, %v3880_v21  ;;  %v3908_v37 = vsel %vm226_vm1, %v216_v23, 0.0 }
  0x24   : > { %v3196_v31 = vpack.i.bf16 %v3832_v58, %v3883_v22  ;;  %v192_v39 = vrot.slane %v3887_v25, 7  ;;  %v2954_v40 = vpack.c.bf16 %v486_v28, %v485_v26  ;;  %v3201_v48 = vpack.i.bf16 %v3857_v6, %v3836_v62 }
  0x25   : > { %2949 = vmatpush3.bf16.msra.mxu0 %v2948_v13  ;;  %v3206_v50 = vpack.i.bf16 %v3805_v49, %v3908_v37  ;;  %v3216_v56 = vpack.i.bf16 %v3883_v22, %v3887_v25  ;;  %v3940_v57 = vsel %vm226_vm1, %v217_v52, 0.0  ;;  %v238_v59 = vsel %vm201_vm0, 0.0, %v236_v53 }
  0x26   : > { %2951 = vmatprep.subr.bf16.mxu0 %v2950_v24  ;;  %v3927_v51 = vsel %vm201_vm0, 0.0, %v192_v39  ;;  %v239_v60 = vrot.slane %v3912_v42, 1  ;;  %v3221_v61 = vpack.i.bf16 %v3836_v62, %v3940_v57  ;;  %v3226_v63 = vpack.i.bf16 %v3908_v37, %v238_v59  ;;  %v490_v24 = vld [vmem:[%s5141_s1 + $0x118] sm:$0xff] }
  0x27   : > { %3152 = vrot.lane.b32.xlu0 %v3151_v44, %s3626_s20  ;;  %3157 = vrot.lane.b32.xlu1 %v3156_v45, %s3625_s19  ;;  %v488_v44 = vld [vmem:[%s5141_s1 + $0x108] sm:$0xff]  ;;  %v2956_v45 = vpack.c.bf16 %v470_v35, %v469_v34  ;;  %v185_v1 = vrot.slane %v3623_v12, 7  ;;  %v3246_v7 = vpack.i.bf16 %v238_v59, %v3623_v12  ;;  %v489_v12 = vld [vmem:[%s5141_s1 + $0x110] sm:$0xff] }
  0x28   : > { %v3951_v0 = vsel %vm226_vm1, %v239_v60, 0.0 }
  0x29   : > { %2953 = vmatpush3.bf16.msra.mxu0 %v2952_v29  ;;  %v202_v4 = vsel %vm201_vm0, 0.0, %v185_v1 }
  0x2a   : > { %2955 = vmatprep.subr.bf16.mxu0 %v2954_v40  ;;  %v3241_v5 = vpack.i.bf16 %v3940_v57, %v202_v4 }
  0x2b   : > { %3162 = vrot.lane.b32.xlu0 %v3161_v54, %s3624_s17  ;;  %3167 = vrot.lane.b32.xlu1 %v3166_v55, %s3626_s20  ;;  %v3931_v54 = vpack.c.bf16 %v488_v44, %v487_v43  ;;  %v3211_v55 = vpack.i.bf16 %v3880_v21, %v3927_v51  ;;  %v2962_v44 = vpack.c.bf16 %v490_v24, %v489_v12 }
  0x2d   : > { %2957 = vmatpush3.bf16.msra.mxu0 %v2956_v45 }
  0x2e   : > { %2959 = vmatprep.subr.bf16.mxu0 %v3931_v54 }
  0x2f   : > { %3172 = vrot.lane.b32.xlu0 %v3171_v2, %s3625_s19  ;;  %3177 = vrot.lane.b32.xlu1 %v3176_v3, %s3624_s17  ;;  %v3231_v2 = vpack.i.bf16 %v3927_v51, %v3912_v42  ;;  %v3236_v3 = vpack.i.bf16 %v3887_v25, %v3951_v0 }
  0x33   : > { %3182 = vrot.lane.b32.xlu0 %v3181_v14, %s3626_s20  ;;  %3187 = vrot.lane.b32.xlu1 %v3186_v15, %s3625_s19 }
  0x37   : > { %3192 = vrot.lane.b32.xlu0 %v3191_v30, %s3624_s17  ;;  %3197 = vrot.lane.b32.xlu1 %v3196_v31, %s3626_s20 }
  0x3b   : > { %3202 = vrot.lane.b32.xlu0 %v3201_v48, %s3625_s19  ;;  %3207 = vrot.lane.b32.xlu1 %v3206_v50, %s3624_s17 }
  0x3f   : > { %3212 = vrot.lane.b32.xlu0 %v3211_v55, %s3626_s20  ;;  %3217 = vrot.lane.b32.xlu1 %v3216_v56, %s3625_s19 }
  0x43   : > { %3222 = vrot.lane.b32.xlu0 %v3221_v61, %s3624_s17  ;;  %3227 = vrot.lane.b32.xlu1 %v3226_v63, %s3626_s20 }
  0x47   : > { %3232 = vrot.lane.b32.xlu0 %v3231_v2, %s3625_s19  ;;  %3237 = vrot.lane.b32.xlu1 %v3236_v3, %s3624_s17 }
  0x4b   : > { %3242 = vrot.lane.b32.xlu0 %v3241_v5, %s3626_s20  ;;  %3247 = vrot.lane.b32.xlu1 %v3246_v7, %s3625_s19 }
  0x91   : > { %v3133_v8 = vpop.permute.xlu0 %3132  ;;  %v3143_v9 = vpop.permute.xlu1 %3142 }
  0x92   : > { %v3135_v10 = vunpack.i.h.bf16 %v3133_v8  ;;  %v3134_v11 = vunpack.i.l.bf16 %v3133_v8  ;;  %v3145_v15 = vunpack.i.h.bf16 %v3143_v9  ;;  %v3144_v16 = vunpack.i.l.bf16 %v3143_v9 }
  0x94   : > { %v405_v26 = vsel %vm404_vm2, %v202_v4, %v3135_v10  ;;  %v431_v30 = vsel %vm404_vm2, %v3743_v18, %v3134_v11 }
  0x95   : > { %v3138_v13 = vpop.permute.xlu0 %3137  ;;  %v3148_v14 = vpop.permute.xlu1 %3147 }
  0x96   : > { %v3140_v17 = vunpack.i.h.bf16 %v3138_v13  ;;  %v3139_v23 = vunpack.i.l.bf16 %v3138_v13  ;;  %v3150_v28 = vunpack.i.h.bf16 %v3148_v14  ;;  %v3149_v29 = vunpack.i.l.bf16 %v3148_v14 }
  0x98   : > { %v439_v31 = vsel %vm413_vm3, %v431_v30, %v3139_v23  ;;  %v3978_v34 = vsel %vm413_vm3, %v405_v26, %v3140_v17  ;;  %v432_v18 = vsel %vm404_vm2, %v3749_v20, %v3149_v29  ;;  %v406_v53 = vsel %vm404_vm2, %v3767_v32, %v3150_v28 }
  0x99   : > { %v3153_v35 = vpop.permute.xlu0 %3152  ;;  %v3158_v39 = vpop.permute.xlu1 %3157  ;;  %v447_v40 = vsel %vm422_vm4, %v439_v31, %v3144_v16  ;;  %v423_v43 = vsel %vm422_vm4, %v3978_v34, %v3145_v15 }
  0x9a   : > { %v3155_v45 = vunpack.i.h.bf16 %v3153_v35  ;;  %v3154_v48 = vunpack.i.l.bf16 %v3153_v35  ;;  %v3160_v50 = vunpack.i.h.bf16 %v3158_v39  ;;  %v3159_v52 = vunpack.i.l.bf16 %v3158_v39  ;;  %578 = vmatprep.mubr.f32.mxu0 %v447_v40 }
  0x9b   : > { %579 = vmatmul.mubr.f32.vlgmr.msra.gmra.mrb[0].mxu0 %v423_v43 }
  0x9c   : > { %v440_v55 = vsel %vm413_vm3, %v432_v18, %v3154_v48  ;;  %v415_v56 = vsel %vm413_vm3, %v406_v53, %v3155_v45  ;;  %2961 = vmatpush3.bf16.msra.mxu0 %v3931_v54 }
  0x9d   : > { %v3163_v59 = vpop.permute.xlu0 %3162  ;;  %v3168_v60 = vpop.permute.xlu1 %3167  ;;  %v448_v61 = vsel %vm422_vm4, %v440_v55, %v3159_v52  ;;  %v424_v63 = vsel %vm422_vm4, %v415_v56, %v3160_v50  ;;  %2963 = vmatprep.subr.bf16.mxu0 %v2962_v44 }
  0x9e   : > { %v3165_v1 = vunpack.i.h.bf16 %v3163_v59  ;;  %v3164_v2 = vunpack.i.l.bf16 %v3163_v59  ;;  %583 = vmatprep.mubr.f32.mxu0 %v448_v61  ;;  %v3170_v20 = vunpack.i.h.bf16 %v3168_v60  ;;  %v3169_v3 = vunpack.i.l.bf16 %v3168_v60 }
  0x9f   : > { %584 = vmatmul.mubr.f32.gmra.mrb[2].mxu0 %v424_v63 }
  0xa0   : > { %v433_v32 = vsel %vm404_vm2, %v3746_v19, %v3164_v2  ;;  %v407_v4 = vsel %vm404_vm2, %v3770_v33, %v3165_v1  ;;  %2965 = vmatpush3.bf16.msra.mxu0 %v2962_v44 }
  0xa1   : > { %v3173_v54 = vpop.permute.xlu0 %3172  ;;  %v3178_v5 = vpop.permute.xlu1 %3177  ;;  %v441_v11 = vsel %vm413_vm3, %v433_v32, %v3169_v3  ;;  %v416_v13 = vsel %vm413_vm3, %v407_v4, %v3170_v20 }
  0xa2   : > { %v3175_v7 = vunpack.i.h.bf16 %v3173_v54  ;;  %v3174_v8 = vunpack.i.l.bf16 %v3173_v54  ;;  %v3180_v9 = vunpack.i.h.bf16 %v3178_v5  ;;  %v3179_v10 = vunpack.i.l.bf16 %v3178_v5 }
  0xa4   : > { %v449_v14 = vsel %vm422_vm4, %v441_v11, %v3174_v8  ;;  %v425_v15 = vsel %vm422_vm4, %v416_v13, %v3175_v7  ;;  %v434_v24 = vsel %vm404_vm2, %v3776_v36, %v3179_v10  ;;  %v408_v26 = vsel %vm404_vm2, %v3788_v41, %v3180_v9 }
  0xa5   : > { %v3183_v16 = vpop.permute.xlu0 %3182  ;;  %588 = vmatprep.mubr.f32.mxu0 %v449_v14  ;;  %v3188_v19 = vpop.permute.xlu1 %3187 }
  0xa6   : > { %v3185_v17 = vunpack.i.h.bf16 %v3183_v16  ;;  %v3184_v33 = vunpack.i.l.bf16 %v3183_v16  ;;  %v3190_v23 = vunpack.i.h.bf16 %v3188_v19  ;;  %v3189_v12 = vunpack.i.l.bf16 %v3188_v19  ;;  %589 = vmatmul.mubr.f32.gmra.mrb[4].mxu0 %v425_v15 }
  0xa8   : > { %v442_v28 = vsel %vm413_vm3, %v434_v24, %v3184_v33  ;;  %v417_v29 = vsel %vm413_vm3, %v408_v26, %v3185_v17 }
  0xa9   : > { %v3193_v30 = vpop.permute.xlu0 %3192  ;;  %v3198_v31 = vpop.permute.xlu1 %3197  ;;  %v450_v35 = vsel %vm422_vm4, %v442_v28, %v3189_v12  ;;  %v426_v39 = vsel %vm422_vm4, %v417_v29, %v3190_v23 }
  0xaa   : > { %v3195_v40 = vunpack.i.h.bf16 %v3193_v30  ;;  %v3194_v43 = vunpack.i.l.bf16 %v3193_v30  ;;  %593 = vmatprep.mubr.f32.mxu0 %v450_v35  ;;  %v3200_v44 = vunpack.i.h.bf16 %v3198_v31  ;;  %v3199_v45 = vunpack.i.l.bf16 %v3198_v31 }
  0xab   : > { %594 = vmatmul.mubr.f32.gmra.mrb[6].mxu0 %v426_v39 }
  0xac   : > { %v435_v36 = vsel %vm404_vm2, %v3805_v49, %v3194_v43  ;;  %v409_v41 = vsel %vm404_vm2, %v3801_v47, %v3195_v40 }
  0xad   : > { %v3203_v48 = vpop.permute.xlu0 %3202  ;;  %v3208_v50 = vpop.permute.xlu1 %3207  ;;  %v443_v56 = vsel %vm413_vm3, %v435_v36, %v3199_v45  ;;  %v418_v59 = vsel %vm413_vm3, %v409_v41, %v3200_v44 }
  0xae   : > { %v3205_v52 = vunpack.i.h.bf16 %v3203_v48  ;;  %v3204_v18 = vunpack.i.l.bf16 %v3203_v48  ;;  %v3210_v53 = vunpack.i.h.bf16 %v3208_v50  ;;  %v3209_v55 = vunpack.i.l.bf16 %v3208_v50  ;;  %v2430_v48 = vld [vmem:[%s5141_s1 + $0x128] sm:$0xff]  ;;  %v2447_v50 = vld [vmem:[%s5141_s1 + $0x1b0] sm:$0xff] }
  0xb0   : > { %v451_v60 = vsel %vm422_vm4, %v443_v56, %v3204_v18  ;;  %v427_v61 = vsel %vm422_vm4, %v418_v59, %v3205_v52  ;;  %v436_v3 = vsel %vm404_vm2, %v3836_v62, %v3209_v55  ;;  %v410_v32 = vsel %vm404_vm2, %v3857_v6, %v3210_v53  ;;  %v2448_v52 = vld [vmem:[%s5141_s1 + $0x1b8] sm:$0xff]  ;;  %v2431_v55 = vld [vmem:[%s5141_s1 + $0x130] sm:$0xff]  ;;  %v2449_v59 = vld [vmem:[%s5141_s1 + $0x1c0] sm:$0xff] }
  0xb1   : > { %v3213_v63 = vpop.permute.xlu0 %3212  ;;  %598 = vmatprep.mubr.f32.mxu0 %v451_v60  ;;  %v3218_v49 = vpop.permute.xlu1 %3217  ;;  %v2970_v53 = vpack.c.bf16 %v2448_v52, %v2447_v50  ;;  %v2432_v56 = vld [vmem:[%s5141_s1 + $0x138] sm:$0xff]  ;;  %v2450_v60 = vld [vmem:[%s5141_s1 + $0x1c8] sm:$0xff] }
  0xb2   : > { %v3215_v1 = vunpack.i.h.bf16 %v3213_v63  ;;  %v3214_v2 = vunpack.i.l.bf16 %v3213_v63  ;;  %v3220_v47 = vunpack.i.h.bf16 %v3218_v49  ;;  %v3219_v20 = vunpack.i.l.bf16 %v3218_v49  ;;  %599 = vmatmul.mubr.f32.gmra.mrb[8].mxu0 %v427_v61  ;;  %v2433_v49 = vld [vmem:[%s5141_s1 + $0x140] sm:$0xff] }
  0xb3   : > { %v2972_v61 = vpack.c.bf16 %v2432_v56, %v2431_v55  ;;  %v2974_v63 = vpack.c.bf16 %v2450_v60, %v2449_v59 }
  0xb4   : > { %v444_v4 = vsel %vm413_vm3, %v436_v3, %v3214_v2  ;;  %v419_v54 = vsel %vm413_vm3, %v410_v32, %v3215_v1  ;;  %v2434_v1 = vld [vmem:[%s5141_s1 + $0x148] sm:$0xff]  ;;  %v2451_v2 = vld [vmem:[%s5141_s1 + $0x1d0] sm:$0xff] }
  0xb5   : > { %v3223_v5 = vpop.permute.xlu0 %3222  ;;  %v3228_v7 = vpop.permute.xlu1 %3227  ;;  %v452_v8 = vsel %vm422_vm4, %v444_v4, %v3219_v20  ;;  %v428_v9 = vsel %vm422_vm4, %v419_v54, %v3220_v47  ;;  %v2452_v47 = vld [vmem:[%s5141_s1 + $0x1d8] sm:$0xff]  ;;  %v2976_v20 = vpack.c.bf16 %v2434_v1, %v2433_v49  ;;  %v2435_v32 = vld [vmem:[%s5141_s1 + $0x150] sm:$0xff]  ;;  %v2453_v54 = vld [vmem:[%s5141_s1 + $0x1e0] sm:$0xff] }
  0xb6   : > { %v3225_v10 = vunpack.i.h.bf16 %v3223_v5  ;;  %v3224_v11 = vunpack.i.l.bf16 %v3223_v5  ;;  %603 = vmatprep.mubr.f32.mxu0 %v452_v8  ;;  %v3230_v13 = vunpack.i.h.bf16 %v3228_v7  ;;  %v3229_v14 = vunpack.i.l.bf16 %v3228_v7  ;;  %v2436_v4 = vld [vmem:[%s5141_s1 + $0x158] sm:$0xff]  ;;  %v2454_v5 = vld [vmem:[%s5141_s1 + $0x1e8] sm:$0xff]  ;;  %v2459_v49 = vld [vmem:[%s5141_s1 + $0x210] sm:$0xff] }
  0xb7   : > { %604 = vmatmul.mubr.f32.gmra.mrb[10].mxu0 %v428_v9  ;;  %v2978_v3 = vpack.c.bf16 %v2452_v47, %v2451_v2  ;;  %v2980_v7 = vpack.c.bf16 %v2436_v4, %v2435_v32  ;;  %v2982_v8 = vpack.c.bf16 %v2454_v5, %v2453_v54  ;;  %v2437_v9 = vld [vmem:[%s5141_s1 + $0x160] sm:$0xff]  ;;  %v2460_v1 = vld [vmem:[%s5141_s1 + $0x218] sm:$0xff]  ;;  %v2443_v2 = vld [vmem:[%s5141_s1 + $0x190] sm:$0xff] }
  0xb8   : > { %v437_v62 = vsel %vm404_vm2, %v3887_v25, %v3224_v11  ;;  %v411_v6 = vsel %vm404_vm2, %v3883_v22, %v3225_v10  ;;  %v2438_v10 = vld [vmem:[%s5141_s1 + $0x168] sm:$0xff]  ;;  %v2455_v11 = vld [vmem:[%s5141_s1 + $0x1f0] sm:$0xff]  ;;  %v2994_v32 = vpack.c.bf16 %v2460_v1, %v2459_v49  ;;  %v2444_v4 = vld [vmem:[%s5141_s1 + $0x198] sm:$0xff] }
  0xb9   : > { %v3233_v15 = vpop.permute.xlu0 %3232  ;;  %v3238_v16 = vpop.permute.xlu1 %3237  ;;  %v445_v12 = vsel %vm413_vm3, %v437_v62, %v3229_v14  ;;  %v420_v24 = vsel %vm413_vm3, %v411_v6, %v3230_v13  ;;  %v2456_v13 = vld [vmem:[%s5141_s1 + $0x1f8] sm:$0xff]  ;;  %v2984_v14 = vpack.c.bf16 %v2438_v10, %v2437_v9  ;;  %v2439_v6 = vld [vmem:[%s5141_s1 + $0x170] sm:$0xff]  ;;  %v2996_v9 = vpack.c.bf16 %v2444_v4, %v2443_v2 }
  0xba   : > { %v3235_v19 = vunpack.i.h.bf16 %v3233_v15  ;;  %v3234_v17 = vunpack.i.l.bf16 %v3233_v15  ;;  %v3240_v33 = vunpack.i.h.bf16 %v3238_v16  ;;  %v3239_v23 = vunpack.i.l.bf16 %v3238_v16  ;;  %v2440_v15 = vld [vmem:[%s5141_s1 + $0x178] sm:$0xff] }
  0xbb   : > { %v2986_v62 = vpack.c.bf16 %v2456_v13, %v2455_v11  ;;  %v2988_v16 = vpack.c.bf16 %v2440_v15, %v2439_v6 }
  0xbc   : > { %v453_v26 = vsel %vm422_vm4, %v445_v12, %v3234_v17  ;;  %v429_v28 = vsel %vm422_vm4, %v420_v24, %v3235_v19  ;;  %v438_v39 = vsel %vm404_vm2, %v3912_v42, %v3239_v23  ;;  %v412_v40 = vsel %vm404_vm2, %v3927_v51, %v3240_v33  ;;  %v2445_v51 = vld [vmem:[%s5141_s1 + $0x1a0] sm:$0xff] }
  0xbd   : > { %v3243_v29 = vpop.permute.xlu0 %3242  ;;  %608 = vmatprep.mubr.f32.mxu0 %v453_v26  ;;  %v3248_v25 = vpop.permute.xlu1 %3247 }
  0xbe   : > { %v3245_v30 = vunpack.i.h.bf16 %v3243_v29  ;;  %v4032_v31 = vunpack.i.l.bf16 %v3243_v29  ;;  %v3250_v22 = vunpack.i.h.bf16 %v3248_v25  ;;  %v4034_v35 = vunpack.i.l.bf16 %v3248_v25  ;;  %609 = vmatmul.mubr.f32.gmra.mrb[12].mxu0 %v429_v28 }
  0xc0   : > { %v446_v43 = vsel %vm413_vm3, %v438_v39, %v4032_v31  ;;  %v421_v44 = vsel %vm413_vm3, %v412_v40, %v3245_v30 }
  0xc1   : > { %v454_v45 = vsel %vm422_vm4, %v446_v43, %v4034_v35  ;;  %v430_v36 = vsel %vm422_vm4, %v421_v44, %v3250_v22 }
  0xc2   : > { %613 = vmatprep.mubr.f32.mxu0 %v454_v45 }
  0xc3   : > { %614 = vmatmul.mubr.f32.gmra.mrb[14].mxu0 %v430_v36 }
  0xc4   : > { %2854 = vmatprep.mubr.msk.f32.mxu0 %vm404_vm2, %v3779_v38  ;;  %v2461_v38 = vld [vmem:[%s5141_s1 + $0x220] sm:$0xff] }
  0xc7   : > { %2855 = vmatmul.mubr.msk.f32.vlgmr.msra.gmra.mrb[16].mxu0 %vm404_vm2, %v3798_v46  ;;  %v2462_v46 = vld [vmem:[%s5141_s1 + $0x228] sm:$0xff] }
  0xc8   : > { %2857 = vmatprep.mubr.msk.f32.mxu0 %vm404_vm2, %v3832_v58  ;;  %v2998_v58 = vpack.c.bf16 %v2462_v46, %v2461_v38 }
  0xca   : > { %2999 = vmatprep.subr.bf16.mxu0 %v2998_v58 }
  0xcb   : > { %2858 = vmatmul.mubr.msk.f32.gmra.mrb[18].mxu0 %vm404_vm2, %v3880_v21  ;;  %v2463_v21 = vld [vmem:[%s5141_s1 + $0x230] sm:$0xff] }
  0xcc   : > { %2860 = vmatprep.mubr.msk.f32.mxu0 %vm404_vm2, %v3908_v37  ;;  %3001 = vmatpush3.bf16.msra.mxu0 %v2998_v58  ;;  %v2464_v37 = vld [vmem:[%s5141_s1 + $0x238] sm:$0xff] }
  0xcd   : > { %v3002_v42 = vpack.c.bf16 %v2464_v37, %v2463_v21 }
  0xcf   : > { %2861 = vmatmul.mubr.msk.f32.gmra.mrb[20].mxu0 %vm404_vm2, %v3940_v57  ;;  %3003 = vmatprep.subr.bf16.mxu0 %v3002_v42  ;;  %v2446_v57 = vld [vmem:[%s5141_s1 + $0x1a8] sm:$0xff] }
  0xd0   : > { %2863 = vmatprep.mubr.msk.f32.mxu0 %vm404_vm2, %v3951_v0  ;;  %3005 = vmatpush3.bf16.msra.mxu0 %v3002_v42  ;;  %v2429_v0 = vld [vmem:[%s5141_s1 + $0x120] sm:$0xff]  ;;  %v2966_v41 = vpack.c.bf16 %v2446_v57, %v2445_v51 }
  0xd1   : > { %v2968_v18 = vpack.c.bf16 %v2430_v48, %v2429_v0  ;;  %v2420_v42 = vld [vmem:[%s5142_s2] ss:$0 sm:$0xff] }
  0xd2   : > { %2967 = vmatprep.subr.bf16.mxu1 %v2966_v41  ;;  %v2457_v0 = vld [vmem:[%s5141_s1 + $0x200] sm:$0xff]  ;;  %v2458_v41 = vld [vmem:[%s5141_s1 + $0x208] sm:$0xff] }
  0xd3   : > { %2864 = vmatmul.mubr.msk.f32.gmra.mrb[22].mxu0 %vm404_vm2, %v3761_v27  ;;  %2969 = vmatpush3.bf16.msra.mxu1 %v2968_v18  ;;  %v2441_v48 = vld [vmem:[%s5141_s1 + $0x180] sm:$0xff]  ;;  %v2990_v18 = vpack.c.bf16 %v2458_v41, %v2457_v0 }
  0xd4   : > { %2971 = vmatprep.subr.bf16.mxu1 %v2970_v53  ;;  %v2442_v53 = vld [vmem:[%s5141_s1 + $0x188] sm:$0xff] }
  0xd5   : > { %v2992_v59 = vpack.c.bf16 %v2442_v53, %v2441_v48 }
  0xd7   : > { %2973 = vmatpush3.bf16.msra.mxu1 %v2972_v61 }
  0xd8   : > { %2975 = vmatprep.subr.bf16.mxu1 %v2974_v63 }
  0xdb   : > { %2977 = vmatpush3.bf16.msra.mxu1 %v2976_v20 }
  0xdc   : > { %2979 = vmatprep.subr.bf16.mxu1 %v2978_v3 }
  0xdf   : > { %2981 = vmatpush3.bf16.msra.mxu1 %v2980_v7 }
  0xe0   : > { %2983 = vmatprep.subr.bf16.mxu1 %v2982_v8 }
  0xe3   : > { %2985 = vmatpush3.bf16.msra.mxu1 %v2984_v14 }
  0xe4   : > { %2987 = vmatprep.subr.bf16.mxu1 %v2986_v62 }
  0xe7   : > { %2989 = vmatpush3.bf16.msra.mxu1 %v2988_v16 }
  0xe8   : > { %2991 = vmatprep.subr.bf16.mxu1 %v2990_v18 }
  0xeb   : > { %2993 = vmatpush3.bf16.msra.mxu1 %v2992_v59 }
  0xec   : > { %2995 = vmatprep.subr.bf16.mxu1 %v2994_v32 }
  0xef   : > { %2997 = vmatpush3.bf16.msra.mxu1 %v2996_v9 }
 0x16e   : > { %v2606_v19 = vpop.f32.mrb[0].mxu0 }
 0x16f   : > { %v2607_v17 = vpop.f32.mrb[1].mxu0 }
 0x170   : > { %v2608_v33 = vadd.f32 %v2607_v17, %v2606_v19 }
 0x172   : > { %v2609_v23 = vpop.f32.mrb[2].mxu0  ;;  %v581_v52 = vadd.f32 %v2608_v33, %v2420_v42 }
 0x173   : > { %v2610_v12 = vpop.f32.mrb[3].mxu0 }
 0x174   : > { %v2611_v24 = vadd.f32 %v2610_v12, %v2609_v23 }
 0x176   : > { %v586_v57 = vadd.f32 %v2611_v24, %v2420_v42 }
 0x179   : > { %v2612_v26 = vpop.f32.mrb[4].mxu0 }
 0x17a   : > { %v2613_v28 = vpop.f32.mrb[5].mxu0 }
 0x17b   : > { %v2614_v29 = vadd.f32 %v2613_v28, %v2612_v26 }
 0x17d   : > { %v591_v3 = vadd.f32 %v2614_v29, %v2420_v42 }
 0x17e   : > { %v2615_v25 = vpop.f32.mrb[6].mxu0 }
 0x17f   : > { %v2616_v30 = vpop.f32.mrb[7].mxu0 }
 0x180   : > { %v2617_v22 = vadd.f32 %v2616_v30, %v2615_v25 }
 0x182   : > { %v596_v63 = vadd.f32 %v2617_v22, %v2420_v42 }
 0x185   : > { %v2618_v39 = vpop.f32.mrb[8].mxu0 }
 0x186   : > { %v2619_v40 = vpop.f32.mrb[9].mxu0 }
 0x187   : > { %v2620_v43 = vadd.f32 %v2619_v40, %v2618_v39 }
 0x189   : > { %v601_v19 = vadd.f32 %v2620_v43, %v2420_v42 }
 0x18a   : > { %v2621_v44 = vpop.f32.mrb[10].mxu0 }
 0x18b   : > { %v2622_v45 = vpop.f32.mrb[11].mxu0 }
 0x18c   : > { %v2623_v36 = vadd.f32 %v2622_v45, %v2621_v44 }
 0x18e   : > { %v606_v62 = vadd.f32 %v2623_v36, %v2420_v42 }
 0x191   : > { %v2624_v38 = vpop.f32.mrb[12].mxu0 }
 0x192   : > { %v2625_v46 = vpop.f32.mrb[13].mxu0 }
 0x193   : > { %v2626_v58 = vadd.f32 %v2625_v46, %v2624_v38 }
 0x195   : > { %v611_v43 = vadd.f32 %v2626_v58, %v2420_v42 }
 0x196   : > { %v2627_v21 = vpop.f32.mrb[14].mxu0 }
 0x197   : > { %v2628_v37 = vpop.f32.mrb[15].mxu0 }
 0x198   : > { %v2629_v51 = vadd.f32 %v2628_v37, %v2627_v21 }
 0x19a   : > { %v2856_v50 = vpop.f32.mrb[16].mxu0  ;;  %v616_v40 = vadd.f32 %v2629_v51, %v2420_v42 }
 0x19b   : > { %v691_v55 = vadd.f32 %v2856_v50, %v586_v57  ;;  %v685_v56 = vpop.f32.mrb[17].mxu0 }
 0x19c   : > { %v686_v60 = vadd.f32 %v685_v56, %v581_v52 }
 0x19d   : > { %v4161_v61 = vmax.f32 %v691_v55, 0.0 }
 0x19e   : > { %v4172_v47 = vmax.f32 %v686_v60, 0.0  ;;  %v2859_v20 = vpop.f32.mrb[18].mxu0 }
 0x19f   : > { %v701_v54 = vadd.f32 %v2859_v20, %v596_v63  ;;  %v695_v5 = vpop.f32.mrb[19].mxu0  ;;  %v761_v7 = vrot.slane %v4161_v61, 1  ;;  %v740_v8 = vrot.slane %v4161_v61, 7 }
 0x1a0   : > { %v696_v10 = vadd.f32 %v695_v5, %v591_v3  ;;  %v760_v11 = vrot.slane %v4172_v47, 1  ;;  %v739_v13 = vrot.slane %v4172_v47, 7 }
 0x1a1   : > { %v4181_v14 = vmax.f32 %v701_v54, 0.0  ;;  %v4184_v6 = vsel %vm226_vm1, %v761_v7, 0.0  ;;  %v4192_v33 = vsel %vm201_vm0, 0.0, %v740_v8 }
 0x1a2   : > { %v4186_v15 = vmax.f32 %v696_v10, 0.0  ;;  %v2862_v16 = vpop.f32.mrb[20].mxu0  ;;  %2874 = vmatprep.mubr.msk.f32.mxu0 %vm404_vm2, %v4184_v6  ;;  %v774_v17 = vsel %vm226_vm1, %v760_v11, 0.0  ;;  %v4197_v28 = vsel %vm201_vm0, 0.0, %v739_v13 }
 0x1a3   : > { %v711_v23 = vadd.f32 %v2862_v16, %v606_v62  ;;  %v705_v12 = vpop.f32.mrb[21].mxu0  ;;  %v3251_v24 = vpack.i.bf16 %v4184_v6, %v774_v17  ;;  %v763_v26 = vrot.slane %v4181_v14, 1  ;;  %v742_v44 = vrot.slane %v4181_v14, 7 }
 0x1a4   : > { %v706_v29 = vadd.f32 %v705_v12, %v601_v19  ;;  %v3261_v25 = vpack.i.bf16 %v4192_v33, %v4186_v15  ;;  %v762_v30 = vrot.slane %v4186_v15, 1  ;;  %v741_v22 = vrot.slane %v4186_v15, 7 }
 0x1a5   : > { %v4203_v39 = vmax.f32 %v711_v23, 0.0  ;;  %3252 = vrot.lane.b32.xlu0 %v3251_v24, %s3624_s17  ;;  %v3256_v46 = vpack.i.bf16 %v4197_v28, %v4161_v61  ;;  %v777_v58 = vsel %vm226_vm1, %v763_v26, 0.0  ;;  %v4224_v48 = vsel %vm201_vm0, 0.0, %v742_v44 }
 0x1a6   : > { %v4207_v45 = vmax.f32 %v706_v29, 0.0  ;;  %v2865_v36 = vpop.f32.mrb[22].mxu0  ;;  %3262 = vrot.lane.b32.xlu1 %v3261_v25, %s3625_s19  ;;  %v776_v38 = vsel %vm226_vm1, %v762_v30, 0.0  ;;  %v4214_v21 = vsel %vm201_vm0, 0.0, %v741_v22  ;;  %v3266_v55 = vpack.i.bf16 %v4224_v48, %v774_v17 }
 0x1a7   : > { %v721_v37 = vadd.f32 %v2865_v36, %v616_v40  ;;  %v715_v57 = vpop.f32.mrb[23].mxu0  ;;  %2875 = vmatmul.mubr.msk.f32.vlgmr.msra.gmra.mrb[24].mxu0 %vm404_vm2, %v776_v38  ;;  %v3276_v42 = vpack.i.bf16 %v4214_v21, %v4192_v33  ;;  %v765_v51 = vrot.slane %v4203_v39, 1  ;;  %v3281_v59 = vpack.i.bf16 %v776_v38, %v4172_v47 }
 0x1a8   : > { %v716_v0 = vadd.f32 %v715_v57, %v611_v43  ;;  %2877 = vmatprep.mubr.msk.f32.mxu0 %vm404_vm2, %v777_v58  ;;  %v764_v41 = vrot.slane %v4207_v45, 1  ;;  %v743_v63 = vrot.slane %v4207_v45, 7  ;;  %v3271_v2 = vpack.i.bf16 %v777_v58, %v4161_v61 }
 0x1a9   : > { %v4226_v50 = vmax.f32 %v721_v37, 0.0  ;;  %3257 = vrot.lane.b32.xlu0 %v3256_v46, %s3625_s19  ;;  %v779_v53 = vsel %vm226_vm1, %v765_v51, 0.0  ;;  %v3291_v20 = vpack.i.bf16 %v4224_v48, %v4207_v45  ;;  %v744_v3 = vrot.slane %v4203_v39, 7 }
 0x1aa   : > { %v4229_v52 = vmax.f32 %v716_v0, 0.0  ;;  %3277 = vrot.lane.b32.xlu1 %v3276_v42, %s3626_s20  ;;  %v778_v18 = vsel %vm226_vm1, %v764_v41, 0.0  ;;  %v4253_v32 = vsel %vm201_vm0, 0.0, %v743_v63  ;;  %v3286_v4 = vpack.i.bf16 %v4214_v21, %v4181_v14 }
 0x1ab   : > { %2878 = vmatmul.mubr.msk.f32.gmra.mrb[26].mxu0 %vm404_vm2, %v778_v18  ;;  %v785_v56 = vrot.slane %v4226_v50, 1  ;;  %v3306_v54 = vpack.i.bf16 %v4253_v32, %v4184_v6  ;;  %v4263_v5 = vsel %vm201_vm0, 0.0, %v744_v3  ;;  %v3311_v8 = vpack.i.bf16 %v778_v18, %v4186_v15 }
 0x1ac   : > { %2880 = vmatprep.mubr.msk.f32.mxu0 %vm404_vm2, %v779_v53  ;;  %v766_v60 = vrot.slane %v4229_v52, 1  ;;  %v3296_v7 = vpack.i.bf16 %v4263_v5, %v776_v38  ;;  %v745_v9 = vrot.slane %v4229_v52, 7  ;;  %v3301_v10 = vpack.i.bf16 %v779_v53, %v4181_v14 }
 0x1ad   : > { %3267 = vrot.lane.b32.xlu0 %v3266_v55, %s3626_s20  ;;  %v787_v1 = vsel %vm226_vm1, %v785_v56, 0.0  ;;  %v3321_v11 = vpack.i.bf16 %v4263_v5, %v4229_v52  ;;  %v782_v13 = vrot.slane %v4226_v50, 7  ;;  %v3316_v6 = vpack.i.bf16 %v4253_v32, %v4203_v39 }
 0x1ae   : > { %3282 = vrot.lane.b32.xlu1 %v3281_v59, %s3624_s17  ;;  %v780_v49 = vsel %vm226_vm1, %v766_v60, 0.0  ;;  %v4278_v62 = vsel %vm201_vm0, 0.0, %v745_v9  ;;  %v3331_v12 = vpack.i.bf16 %v787_v1, %v4203_v39 }
 0x1af   : > { %2881 = vmatmul.mubr.msk.f32.gmra.mrb[28].mxu0 %vm404_vm2, %v780_v49  ;;  %v3336_v16 = vpack.i.bf16 %v4278_v62, %v777_v58  ;;  %v784_v19 = vsel %vm201_vm0, 0.0, %v782_v13  ;;  %v3341_v23 = vpack.i.bf16 %v780_v49, %v4207_v45  ;;  %v3346_v24 = vpack.i.bf16 %v4278_v62, %v4226_v50 }
 0x1b0   : > { %2883 = vmatprep.mubr.msk.f32.mxu0 %vm404_vm2, %v787_v1  ;;  %v3326_v17 = vpack.i.bf16 %v784_v19, %v778_v18 }
 0x1b1   : > { %3272 = vrot.lane.b32.xlu0 %v3271_v2, %s3624_s17 }
 0x1b2   : > { %3292 = vrot.lane.b32.xlu1 %v3291_v20, %s3625_s19 }
 0x1b3   : > { %2884 = vmatmul.mubr.msk.f32.gmra.mrb[30].mxu0 %vm404_vm2, %v3761_v27 }
 0x1b5   : > { %3287 = vrot.lane.b32.xlu0 %v3286_v4, %s3625_s19 }
 0x1b6   : > { %3307 = vrot.lane.b32.xlu1 %v3306_v54, %s3626_s20 }
 0x1b9   : > { %3297 = vrot.lane.b32.xlu0 %v3296_v7, %s3626_s20 }
 0x1ba   : > { %3312 = vrot.lane.b32.xlu1 %v3311_v8, %s3624_s17 }
 0x1bd   : > { %3302 = vrot.lane.b32.xlu0 %v3301_v10, %s3624_s17 }
 0x1be   : > { %3322 = vrot.lane.b32.xlu1 %v3321_v11, %s3625_s19 }
 0x1c1   : > { %3317 = vrot.lane.b32.xlu0 %v3316_v6, %s3625_s19 }
 0x1c2   : > { %3337 = vrot.lane.b32.xlu1 %v3336_v16, %s3626_s20 }
 0x1c5   : > { %3327 = vrot.lane.b32.xlu0 %v3326_v17, %s3626_s20 }
 0x1c6   : > { %3342 = vrot.lane.b32.xlu1 %v3341_v23, %s3624_s17 }
 0x1c9   : > { %3332 = vrot.lane.b32.xlu0 %v3331_v12, %s3624_s17 }
 0x1ca   : > { %826 = vrot.lane.b32.xlu1 %v779_v53, %s3626_s20 }
 0x1cd   : > { %3347 = vrot.lane.b32.xlu0 %v3346_v24, %s3625_s19 }
 0x1ce   : > { %800 = vrot.lane.b32.xlu1 %v4229_v52, %s3624_s17 }
 0x1d1   : > { %828 = vrot.lane.b32.xlu0 %v780_v49, %s3626_s20 }
 0x1d2   : > { %859 = vrot.lane.b32.xlu1 %v784_v19, %s3625_s19 }
 0x217   : > { %v3253_v26 = vpop.permute.xlu0 %3252 }
 0x218   : > { %v3263_v29 = vpop.permute.xlu1 %3262  ;;  %v3255_v25 = vunpack.i.h.bf16 %v3253_v26  ;;  %v3254_v30 = vunpack.i.l.bf16 %v3253_v26 }
 0x219   : > { %v3264_v51 = vunpack.i.l.bf16 %v3263_v29 }
 0x21a   : > { %v958_v46 = vsel %vm404_vm2, %v4172_v47, %v3254_v30  ;;  %v959_v37 = vsel %vm404_vm2, %v4161_v61, %v3255_v25  ;;  %v3265_v61 = vunpack.i.h.bf16 %v3263_v29 }
 0x21b   : > { %v3258_v22 = vpop.permute.xlu0 %3257 }
 0x21c   : > { %v3278_v40 = vpop.permute.xlu1 %3277  ;;  %v3260_v43 = vunpack.i.h.bf16 %v3258_v22  ;;  %v3259_v38 = vunpack.i.l.bf16 %v3258_v22 }
 0x21d   : > { %v3280_v44 = vunpack.i.h.bf16 %v3278_v40  ;;  %v3279_v36 = vunpack.i.l.bf16 %v3278_v40 }
 0x21e   : > { %v950_v53 = vsel %vm422_vm4, %v3978_v34, %v3260_v43 }
 0x21f   : > { %v3268_v57 = vpop.permute.xlu0 %3267  ;;  %v966_v58 = vsel %vm413_vm3, %v958_v46, %v3279_v36  ;;  %v967_v42 = vsel %vm413_vm3, %v959_v37, %v3280_v44 }
 0x220   : > { %v3283_v0 = vpop.permute.xlu1 %3282  ;;  %v974_v41 = vsel %vm422_vm4, %v966_v58, %v3259_v38  ;;  %v3269_v55 = vunpack.i.l.bf16 %v3268_v57  ;;  %v975_v47 = vsel %vm422_vm4, %v967_v42, %v3264_v51  ;;  %v3270_v4 = vunpack.i.h.bf16 %v3268_v57 }
 0x221   : > { %v3284_v18 = vunpack.i.l.bf16 %v3283_v0  ;;  %1105 = vmatprep.mubr.f32.mxu1 %v974_v41  ;;  %v3285_v56 = vunpack.i.h.bf16 %v3283_v0 }
 0x222   : > { %1106 = vmatmul.mubr.f32.vlgmr.msra.gmra.mrb[0].mxu1 %v950_v53 }
 0x223   : > { %v3273_v59 = vpop.permute.xlu0 %3272  ;;  %1110 = vmatprep.mubr.f32.mxu1 %v975_v47  ;;  %v936_v60 = vsel %vm404_vm2, %v4197_v28, %v3284_v18  ;;  %v960_v3 = vsel %vm404_vm2, %v4186_v15, %v3285_v56 }
 0x224   : > { %v3293_v63 = vpop.permute.xlu1 %3292  ;;  %v943_v49 = vsel %vm413_vm3, %v936_v60, %v3269_v55  ;;  %v3275_v2 = vunpack.i.h.bf16 %v3273_v59  ;;  %v3274_v20 = vunpack.i.l.bf16 %v3273_v59  ;;  %v968_v28 = vsel %vm413_vm3, %v960_v3, %v3270_v4 }
 0x225   : > { %v951_v1 = vsel %vm422_vm4, %v943_v49, %v3265_v61  ;;  %v3294_v9 = vunpack.i.l.bf16 %v3293_v63 }
 0x226   : > { %1111 = vmatmul.mubr.f32.gmra.mrb[2].mxu1 %v951_v1  ;;  %v937_v16 = vsel %vm404_vm2, %v4192_v33, %v3274_v20  ;;  %v961_v19 = vsel %vm404_vm2, %v4181_v14, %v3275_v2  ;;  %v3295_v33 = vunpack.i.h.bf16 %v3293_v63 }
 0x227   : > { %v3288_v54 = vpop.permute.xlu0 %3287 }
 0x228   : > { %v3289_v7 = vunpack.i.l.bf16 %v3288_v54  ;;  %v3308_v8 = vpop.permute.xlu1 %3307  ;;  %v3290_v13 = vunpack.i.h.bf16 %v3288_v54 }
 0x229   : > { %v3310_v10 = vunpack.i.h.bf16 %v3308_v8  ;;  %v3309_v11 = vunpack.i.l.bf16 %v3308_v8 }
 0x22a   : > { %v976_v6 = vsel %vm422_vm4, %v968_v28, %v3289_v7 }
 0x22b   : > { %v3298_v17 = vpop.permute.xlu0 %3297  ;;  %1115 = vmatprep.mubr.f32.mxu1 %v976_v6  ;;  %v944_v15 = vsel %vm413_vm3, %v937_v16, %v3309_v11  ;;  %v969_v23 = vsel %vm413_vm3, %v961_v19, %v3310_v10 }
 0x22c   : > { %v3313_v12 = vpop.permute.xlu1 %3312  ;;  %v952_v24 = vsel %vm422_vm4, %v944_v15, %v3290_v13  ;;  %v977_v26 = vsel %vm422_vm4, %v969_v23, %v3294_v9  ;;  %v3299_v25 = vunpack.i.l.bf16 %v3298_v17  ;;  %v3300_v37 = vunpack.i.h.bf16 %v3298_v17 }
 0x22d   : > { %v3314_v29 = vunpack.i.l.bf16 %v3313_v12  ;;  %1116 = vmatmul.mubr.f32.gmra.mrb[4].mxu1 %v952_v24  ;;  %v3315_v30 = vunpack.i.h.bf16 %v3313_v12 }
 0x22e   : > { %1120 = vmatprep.mubr.f32.mxu1 %v977_v26 }
 0x22f   : > { %v3303_v22 = vpop.permute.xlu0 %3302  ;;  %v938_v14 = vsel %vm404_vm2, %v4214_v21, %v3314_v29  ;;  %v962_v46 = vsel %vm404_vm2, %v4207_v45, %v3315_v30 }
 0x230   : > { %v3323_v40 = vpop.permute.xlu1 %3322  ;;  %v945_v43 = vsel %vm413_vm3, %v938_v14, %v3299_v25  ;;  %v3305_v36 = vunpack.i.h.bf16 %v3303_v22  ;;  %v3304_v38 = vunpack.i.l.bf16 %v3303_v22  ;;  %v970_v21 = vsel %vm413_vm3, %v962_v46, %v3300_v37 }
 0x231   : > { %v953_v44 = vsel %vm422_vm4, %v945_v43, %v3295_v33  ;;  %v3324_v51 = vunpack.i.l.bf16 %v3323_v40  ;;  %v2508_v43 = vld [vmem:[%s5141_s1 + $0x348] sm:$0xff] }
 0x232   : > { %1121 = vmatmul.mubr.f32.gmra.mrb[6].mxu1 %v953_v44  ;;  %v939_v55 = vsel %vm404_vm2, %v4224_v48, %v3304_v38  ;;  %v963_v56 = vsel %vm404_vm2, %v4203_v39, %v3305_v36  ;;  %v3325_v48 = vunpack.i.h.bf16 %v3323_v40  ;;  %v2507_v40 = vld [vmem:[%s5141_s1 + $0x340] sm:$0xff]  ;;  %v2509_v36 = vld [vmem:[%s5141_s1 + $0x350] sm:$0xff]  ;;  %v2510_v38 = vld [vmem:[%s5141_s1 + $0x358] sm:$0xff] }
 0x233   : > { %v3318_v57 = vpop.permute.xlu0 %3317  ;;  %v3038_v44 = vpack.c.bf16 %v2508_v43, %v2507_v40  ;;  %v3042_v46 = vpack.c.bf16 %v2510_v38, %v2509_v36  ;;  %v2486_v43 = vld [vmem:[%s5141_s1 + $0x298] sm:$0xff]  ;;  %v3552_v38 = vld [vmem:[%s3734_s4 + $0x8] sm:$0xff] }
 0x234   : > { %v3319_v58 = vunpack.i.l.bf16 %v3318_v57  ;;  %v3338_v42 = vpop.permute.xlu1 %3337  ;;  %v3320_v18 = vunpack.i.h.bf16 %v3318_v57 }
 0x235   : > { %v3340_v0 = vunpack.i.h.bf16 %v3338_v42  ;;  %v3339_v41 = vunpack.i.l.bf16 %v3338_v42  ;;  %3039 = vmatprep.subr.bf16.mxu0 %v3038_v44  ;;  %v2492_v42 = vld [vmem:[%s5141_s1 + $0x2c8] sm:$0xff] }
 0x236   : > { %v978_v53 = vsel %vm422_vm4, %v970_v21, %v3319_v58  ;;  %3041 = vmatpush3.bf16.msra.mxu0 %v3038_v44  ;;  %v2491_v58 = vld [vmem:[%s5141_s1 + $0x2c0] sm:$0xff]  ;;  %v2493_v21 = vld [vmem:[%s5141_s1 + $0x2d0] sm:$0xff] }
 0x237   : > { %v3328_v47 = vpop.permute.xlu0 %3327  ;;  %1125 = vmatprep.mubr.f32.mxu1 %v978_v53  ;;  %v946_v45 = vsel %vm413_vm3, %v939_v55, %v3339_v41  ;;  %v971_v61 = vsel %vm413_vm3, %v963_v56, %v3340_v0  ;;  %3043 = vmatprep.subr.bf16.mxu0 %v3042_v46  ;;  %v3006_v0 = vpack.c.bf16 %v2492_v42, %v2491_v58  ;;  %v2476_v41 = vld [vmem:[%s5141_s1 + $0x248] sm:$0xff]  ;;  %v2477_v56 = vld [vmem:[%s5141_s1 + $0x250] sm:$0xff] }
 0x238   : > { %v3343_v59 = vpop.permute.xlu1 %3342  ;;  %v954_v60 = vsel %vm422_vm4, %v946_v45, %v3320_v18  ;;  %v979_v63 = vsel %vm422_vm4, %v971_v61, %v3324_v51  ;;  %v3329_v1 = vunpack.i.l.bf16 %v3328_v47  ;;  %v3330_v28 = vunpack.i.h.bf16 %v3328_v47  ;;  %v2475_v51 = vld [vmem:[%s5141_s1 + $0x240] sm:$0xff]  ;;  %v2494_v18 = vld [vmem:[%s5141_s1 + $0x2d8] sm:$0xff]  ;;  %v2496_v61 = vld [vmem:[%s5141_s1 + $0x2e8] sm:$0xff] }
 0x239   : > { %v3344_v49 = vunpack.i.l.bf16 %v3343_v59  ;;  %1126 = vmatmul.mubr.f32.gmra.mrb[8].mxu1 %v954_v60  ;;  %v3345_v2 = vunpack.i.h.bf16 %v3343_v59  ;;  %v3008_v53 = vpack.c.bf16 %v2476_v41, %v2475_v51  ;;  %v3010_v55 = vpack.c.bf16 %v2494_v18, %v2493_v21  ;;  %v2478_v47 = vld [vmem:[%s5141_s1 + $0x258] sm:$0xff]  ;;  %v2495_v45 = vld [vmem:[%s5141_s1 + $0x2e0] sm:$0xff]  ;;  %3007 = vmatprep.subr.bf16.mxu1 %v3006_v0 }
 0x23a   : > { %1130 = vmatprep.mubr.f32.mxu1 %v979_v63  ;;  %3045 = vmatpush3.bf16.msra.mxu0 %v3042_v46  ;;  %v3012_v59 = vpack.c.bf16 %v2478_v47, %v2477_v56  ;;  %v3014_v60 = vpack.c.bf16 %v2496_v61, %v2495_v45  ;;  %v2479_v63 = vld [vmem:[%s5141_s1 + $0x260] sm:$0xff] }
 0x23b   : > { %v3333_v20 = vpop.permute.xlu0 %3332  ;;  %v940_v39 = vsel %vm404_vm2, %v4253_v32, %v3344_v49  ;;  %v964_v10 = vsel %vm404_vm2, %v4229_v52, %v3345_v2  ;;  %3009 = vmatpush3.bf16.msra.mxu1 %v3008_v53  ;;  %v2480_v49 = vld [vmem:[%s5141_s1 + $0x268] sm:$0xff]  ;;  %v2498_v2 = vld [vmem:[%s5141_s1 + $0x2f8] sm:$0xff]  ;;  %v2503_v51 = vld [vmem:[%s5141_s1 + $0x320] sm:$0xff] }
 0x23c   : > { %v3335_v3 = vunpack.i.h.bf16 %v3333_v20  ;;  %v3334_v4 = vunpack.i.l.bf16 %v3333_v20  ;;  %v827_v54 = vpop.permute.xlu1 %826  ;;  %v947_v7 = vsel %vm413_vm3, %v940_v39, %v3329_v1  ;;  %v972_v17 = vsel %vm413_vm3, %v964_v10, %v3330_v28  ;;  %3011 = vmatprep.subr.bf16.mxu1 %v3010_v55  ;;  %v2497_v1 = vld [vmem:[%s5141_s1 + $0x2f0] sm:$0xff]  ;;  %v2487_v0 = vld [vmem:[%s5141_s1 + $0x2a0] sm:$0xff]  ;;  %v2488_v53 = vld [vmem:[%s5141_s1 + $0x2a8] sm:$0xff] }
 0x23d   : > { %v955_v8 = vsel %vm422_vm4, %v947_v7, %v3325_v48  ;;  %v3016_v48 = vpack.c.bf16 %v2480_v49, %v2479_v63  ;;  %v3018_v20 = vpack.c.bf16 %v2498_v2, %v2497_v1  ;;  %v2481_v39 = vld [vmem:[%s5141_s1 + $0x270] sm:$0xff]  ;;  %v4441_v7 = vld [vmem:[%s5142_s2 + $0x1] ss:$0 sm:$0xff]  ;;  %v3032_v47 = vpack.c.bf16 %v2488_v53, %v2487_v0 }
 0x23e   : > { %v941_v9 = vsel %vm404_vm2, %v4263_v5, %v3334_v4  ;;  %1131 = vmatmul.mubr.f32.gmra.mrb[10].mxu1 %v955_v8  ;;  %v965_v11 = vsel %vm404_vm2, %v4226_v50, %v3335_v3  ;;  %v2482_v3 = vld [vmem:[%s5141_s1 + $0x278] sm:$0xff]  ;;  %v2505_v2 = vld [vmem:[%s5141_s1 + $0x330] sm:$0xff] }
 0x23f   : > { %v3348_v13 = vpop.permute.xlu0 %3347  ;;  %v948_v19 = vsel %vm413_vm3, %v941_v9, %v827_v54  ;;  %v973_v15 = vsel %vm413_vm3, %v965_v11, %v4032_v31  ;;  %3013 = vmatpush3.bf16.msra.mxu1 %v3012_v59  ;;  %v3020_v4 = vpack.c.bf16 %v2482_v3, %v2481_v39 }
 0x240   : > { %v3350_v32 = vunpack.i.h.bf16 %v3348_v13  ;;  %v3349_v6 = vunpack.i.l.bf16 %v3348_v13  ;;  %v801_v16 = vpop.permute.xlu1 %800  ;;  %v981_v26 = vsel %vm422_vm4, %v973_v15, %v4034_v35  ;;  %3015 = vmatprep.subr.bf16.mxu1 %v3014_v60  ;;  %v2499_v13 = vld [vmem:[%s5141_s1 + $0x300] sm:$0xff]  ;;  %v2484_v15 = vld [vmem:[%s5141_s1 + $0x288] sm:$0xff] }
 0x241   : > { %v942_v52 = vsel %vm404_vm2, %v4278_v62, %v801_v16 }
 0x242   : > { %v980_v5 = vsel %vm422_vm4, %v972_v17, %v3349_v6  ;;  %v956_v23 = vsel %vm422_vm4, %v948_v19, %v3350_v32  ;;  %v2500_v32 = vld [vmem:[%s5141_s1 + $0x308] sm:$0xff]  ;;  %v2483_v6 = vld [vmem:[%s5141_s1 + $0x280] sm:$0xff] }
 0x243   : > { %v829_v50 = vpop.permute.xlu0 %828  ;;  %1135 = vmatprep.mubr.f32.mxu1 %v980_v5  ;;  %3017 = vmatpush3.bf16.msra.mxu1 %v3016_v48  ;;  %v3022_v17 = vpack.c.bf16 %v2500_v32, %v2499_v13  ;;  %v3024_v5 = vpack.c.bf16 %v2484_v15, %v2483_v6  ;;  %v2506_v48 = vld [vmem:[%s5141_s1 + $0x338] sm:$0xff] }
 0x244   : > { %v949_v12 = vsel %vm413_vm3, %v942_v52, %v829_v50  ;;  %v860_v24 = vpop.permute.xlu1 %859  ;;  %1136 = vmatmul.mubr.f32.gmra.mrb[12].mxu1 %v956_v23  ;;  %3019 = vmatprep.subr.bf16.mxu1 %v3018_v20  ;;  %v3551_v23 = vld [vmem:[%s3734_s4] sm:$0xff]  ;;  %v2489_v20 = vld [vmem:[%s5141_s1 + $0x2b0] sm:$0xff] }
 0x245   : > { %1140 = vmatprep.mubr.f32.mxu1 %v981_v26  ;;  %v957_v29 = vsel %vm422_vm4, %v949_v12, %v860_v24  ;;  %v2501_v12 = vld [vmem:[%s5141_s1 + $0x310] sm:$0xff]  ;;  %v2502_v24 = vld [vmem:[%s5141_s1 + $0x318] sm:$0xff] }
 0x246   : > { %v2485_v26 = vld [vmem:[%s5141_s1 + $0x290] sm:$0xff]  ;;  %v3026_v40 = vpack.c.bf16 %v2502_v24, %v2501_v12 }
 0x247   : > { %3021 = vmatpush3.bf16.msra.mxu1 %v3020_v4  ;;  %v3028_v36 = vpack.c.bf16 %v2486_v43, %v2485_v26  ;;  %v3034_v4 = vpack.c.bf16 %v2506_v48, %v2505_v2 }
 0x248   : > { %1141 = vmatmul.mubr.f32.gmra.mrb[14].mxu1 %v957_v29  ;;  %3023 = vmatprep.subr.bf16.mxu1 %v3022_v17 }
 0x24b   : > { %3025 = vmatpush3.bf16.msra.mxu1 %v3024_v5  ;;  %v3554_v5 = vld [vmem:[%s3734_s4 + $0x18] sm:$0xff] }
 0x24c   : > { %3027 = vmatprep.subr.bf16.mxu1 %v3026_v40 }
 0x24f   : > { %3029 = vmatpush3.bf16.msra.mxu1 %v3028_v36 }
 0x27a   : > { %v4364_v25 = vpop.f32.mrb[24].mxu0 }
 0x27b   : > { %v1212_v30 = vpop.f32.mrb[25].mxu0 }
 0x27e   : > { %v4366_v33 = vpop.f32.mrb[26].mxu0 }
 0x27f   : > { %v4368_v22 = vpop.f32.mrb[27].mxu0 }
 0x282   : > { %v4370_v62 = vpop.f32.mrb[28].mxu0 }
 0x283   : > { %v4372_v14 = vpop.f32.mrb[29].mxu0 }
 0x286   : > { %v4386_v37 = vpop.f32.mrb[30].mxu0 }
 0x287   : > { %v4388_v57 = vpop.f32.mrb[31].mxu0 }
 0x2f5   : > { %v2674_v54 = vpop.f32.mrb[0].mxu1 }
 0x2f6   : > { %v2675_v8 = vpop.f32.mrb[1].mxu1 }
 0x2f7   : > { %v2676_v9 = vadd.f32 %v2675_v8, %v2674_v54  ;;  %v2490_v54 = vld [vmem:[%s5141_s1 + $0x2b8] sm:$0xff]  ;;  %v3553_v8 = vld [vmem:[%s3734_s4 + $0x10] sm:$0xff] }
 0x2f9   : > { %v1108_v10 = vadd.f32 %v2676_v9, %v4441_v7  ;;  %v2677_v11 = vpop.f32.mrb[2].mxu1 }
 0x2fa   : > { %v2678_v28 = vpop.f32.mrb[3].mxu1 }
 0x2fb   : > { %v1213_v16 = vadd.f32 %v1212_v30, %v1108_v10  ;;  %v2679_v19 = vadd.f32 %v2678_v28, %v2677_v11  ;;  %v3036_v11 = vpack.c.bf16 %v2490_v54, %v2489_v20 }
 0x2fd   : > { %v1251_v52 = vadd.f32 %v3551_v23, %v1213_v16  ;;  %v1113_v50 = vadd.f32 %v2679_v19, %v4441_v7 }
 0x2ff   : > { %v4467_v29 = vmax.f32 %v1251_v52, 0.0  ;;  %v1218_v30 = vadd.f32 %v4364_v25, %v1113_v50  ;;  %v2504_v25 = vld [vmem:[%s5141_s1 + $0x328] sm:$0xff] }
 0x300   : > { %v2680_v44 = vpop.f32.mrb[4].mxu1  ;;  %v3030_v18 = vpack.c.bf16 %v2504_v25, %v2503_v51  ;;  %v3555_v25 = vld [vmem:[%s3734_s4 + $0x20] sm:$0xff] }
 0x301   : > { %v1252_v46 = vadd.f32 %v3552_v38, %v1218_v30  ;;  %v2681_v58 = vpop.f32.mrb[5].mxu1  ;;  %v1274_v42 = vrot.slane %v4467_v29, 7  ;;  %v1295_v21 = vrot.slane %v4467_v29, 1 }
 0x302   : > { %v2682_v41 = vadd.f32 %v2681_v58, %v2680_v44  ;;  %3031 = vmatprep.subr.bf16.mxu1 %v3030_v18 }
 0x303   : > { %v4488_v55 = vmax.f32 %v1252_v46, 0.0  ;;  %v4491_v56 = vsel %vm201_vm0, 0.0, %v1274_v42  ;;  %v1309_v1 = vsel %vm226_vm1, %v1295_v21, 0.0  ;;  %3033 = vmatpush3.bf16.msra.mxu1 %v3032_v47 }
 0x304   : > { %v1118_v45 = vadd.f32 %v2682_v41, %v4441_v7  ;;  %3035 = vmatprep.subr.bf16.mxu1 %v3034_v4 }
 0x305   : > { %v2683_v61 = vpop.f32.mrb[6].mxu1  ;;  %v3351_v59 = vpack.i.bf16 %v4491_v56, %v4488_v55  ;;  %v1296_v60 = vrot.slane %v4488_v55, 1  ;;  %v1275_v3 = vrot.slane %v4488_v55, 7 }
 0x306   : > { %v1223_v63 = vadd.f32 %v4368_v22, %v1118_v45  ;;  %v2684_v49 = vpop.f32.mrb[7].mxu1 }
 0x307   : > { %v2685_v39 = vadd.f32 %v2684_v49, %v2683_v61  ;;  %3352 = vrot.lane.b32.xlu0 %v3351_v59, %s3625_s19  ;;  %v4510_v22 = vsel %vm226_vm1, %v1296_v60, 0.0  ;;  %3037 = vmatpush3.bf16.msra.mxu1 %v3036_v11  ;;  %v4526_v6 = vsel %vm201_vm0, 0.0, %v1275_v3 }
 0x308   : > { %v1253_v9 = vadd.f32 %v3553_v8, %v1223_v63  ;;  %2894 = vmatprep.mubr.msk.f32.mxu0 %vm404_vm2, %v4510_v22  ;;  %v3356_v10 = vpack.i.bf16 %v4510_v22, %v1309_v1  ;;  %v3556_v63 = vld [vmem:[%s3734_s4 + $0x28] sm:$0xff] }
 0x309   : > { %v1123_v28 = vadd.f32 %v2685_v39, %v4441_v7 }
 0x30a   : > { %v4521_v13 = vmax.f32 %v1253_v9, 0.0 }
 0x30b   : > { %v1228_v32 = vadd.f32 %v4366_v33, %v1123_v28  ;;  %3357 = vrot.lane.b32.xlu0 %v3356_v10, %s3624_s17 }
 0x30c   : > { %v2686_v16 = vpop.f32.mrb[8].mxu1  ;;  %v3361_v19 = vpack.i.bf16 %v4526_v6, %v4521_v13  ;;  %v1297_v17 = vrot.slane %v4521_v13, 1  ;;  %v1276_v15 = vrot.slane %v4521_v13, 7 }
 0x30d   : > { %v1254_v23 = vadd.f32 %v3554_v5, %v1228_v32  ;;  %v2687_v52 = vpop.f32.mrb[9].mxu1 }
 0x30e   : > { %v2688_v50 = vadd.f32 %v2687_v52, %v2686_v16  ;;  %3362 = vrot.lane.b32.xlu1 %v3361_v19, %s3625_s19  ;;  %v4535_v33 = vsel %vm226_vm1, %v1297_v17, 0.0  ;;  %v4538_v12 = vsel %vm201_vm0, 0.0, %v1276_v15  ;;  %v3557_v16 = vld [vmem:[%s3734_s4 + $0x30] sm:$0xff] }
 0x30f   : > { %v4540_v24 = vmax.f32 %v1254_v23, 0.0  ;;  %2895 = vmatmul.mubr.msk.f32.vlgmr.msra.gmra.mrb[32].mxu0 %vm404_vm2, %v4535_v33  ;;  %v3366_v26 = vpack.i.bf16 %v4538_v12, %v4526_v6  ;;  %v3558_v23 = vld [vmem:[%s3734_s4 + $0x38] sm:$0xff] }
 0x310   : > { %v1128_v30 = vadd.f32 %v2688_v50, %v4441_v7 }
 0x311   : > { %v2689_v40 = vpop.f32.mrb[10].mxu1  ;;  %v3376_v43 = vpack.i.bf16 %v4538_v12, %v4540_v24  ;;  %v1298_v44 = vrot.slane %v4540_v24, 1  ;;  %v1277_v36 = vrot.slane %v4540_v24, 7 }
 0x312   : > { %v1233_v38 = vadd.f32 %v4372_v14, %v1128_v30  ;;  %v2690_v46 = vpop.f32.mrb[11].mxu1  ;;  %3367 = vrot.lane.b32.xlu1 %v3366_v26, %s3626_s20  ;;  %v3371_v14 = vpack.i.bf16 %v4535_v33, %v4467_v29 }
 0x313   : > { %v2691_v58 = vadd.f32 %v2690_v46, %v2689_v40  ;;  %3377 = vrot.lane.b32.xlu0 %v3376_v43, %s3625_s19  ;;  %v4555_v42 = vsel %vm226_vm1, %v1298_v44, 0.0  ;;  %v4558_v51 = vsel %vm201_vm0, 0.0, %v1277_v36 }
 0x314   : > { %v1255_v0 = vadd.f32 %v3555_v25, %v1233_v38  ;;  %2897 = vmatprep.mubr.msk.f32.mxu0 %vm404_vm2, %v4555_v42  ;;  %v3381_v41 = vpack.i.bf16 %v4558_v51, %v1309_v1  ;;  %v3386_v2 = vpack.i.bf16 %v4555_v42, %v4488_v55 }
 0x315   : > { %v1133_v21 = vadd.f32 %v2691_v58, %v4441_v7 }
 0x316   : > { %v4567_v18 = vmax.f32 %v1255_v0, 0.0  ;;  %3372 = vrot.lane.b32.xlu1 %v3371_v14, %s3624_s17 }
 0x317   : > { %v1238_v53 = vadd.f32 %v4370_v62, %v1133_v21  ;;  %v2692_v47 = vpop.f32.mrb[12].mxu1  ;;  %3382 = vrot.lane.b32.xlu0 %v3381_v41, %s3626_s20 }
 0x318   : > { %v2693_v45 = vpop.f32.mrb[13].mxu1  ;;  %v3391_v61 = vpack.i.bf16 %v4558_v51, %v4567_v18  ;;  %v1299_v59 = vrot.slane %v4567_v18, 1  ;;  %v1278_v60 = vrot.slane %v4567_v18, 7 }
 0x319   : > { %v1256_v49 = vadd.f32 %v3556_v63, %v1238_v53  ;;  %v2694_v1 = vadd.f32 %v2693_v45, %v2692_v47 }
 0x31a   : > { %3392 = vrot.lane.b32.xlu1 %v3391_v61, %s3625_s19  ;;  %v1313_v62 = vsel %vm226_vm1, %v1299_v59, 0.0  ;;  %v4582_v48 = vsel %vm201_vm0, 0.0, %v1278_v60 }
 0x31b   : > { %v4584_v20 = vmax.f32 %v1256_v49, 0.0  ;;  %v2695_v39 = vpop.f32.mrb[14].mxu1  ;;  %3387 = vrot.lane.b32.xlu0 %v3386_v2, %s3624_s17  ;;  %2898 = vmatmul.mubr.msk.f32.gmra.mrb[34].mxu0 %vm404_vm2, %v1313_v62  ;;  %v1138_v3 = vadd.f32 %v2694_v1, %v4441_v7  ;;  %v3396_v4 = vpack.i.bf16 %v4582_v48, %v4510_v22 }
 0x31c   : > { %v2696_v54 = vpop.f32.mrb[15].mxu1 }
 0x31d   : > { %v2697_v8 = vadd.f32 %v2696_v54, %v2695_v39  ;;  %v1243_v9 = vadd.f32 %v4388_v57, %v1138_v3  ;;  %v3406_v10 = vpack.i.bf16 %v4582_v48, %v4584_v20  ;;  %v1300_v11 = vrot.slane %v4584_v20, 1 }
 0x31e   : > { %3397 = vrot.lane.b32.xlu1 %v3396_v4, %s3626_s20  ;;  %v1279_v28 = vrot.slane %v4584_v20, 7  ;;  %v3401_v57 = vpack.i.bf16 %v1313_v62, %v4521_v13 }
 0x31f   : > { %v1143_v32 = vadd.f32 %v2697_v8, %v4441_v7  ;;  %v1257_v19 = vadd.f32 %v3557_v16, %v1243_v9  ;;  %3407 = vrot.lane.b32.xlu0 %v3406_v10, %s3625_s19  ;;  %v1314_v22 = vsel %vm226_vm1, %v1300_v11, 0.0 }
 0x320   : > { %2900 = vmatprep.mubr.msk.f32.mxu0 %vm404_vm2, %v1314_v22  ;;  %v4604_v17 = vsel %vm201_vm0, 0.0, %v1279_v28  ;;  %v3416_v43 = vpack.i.bf16 %v1314_v22, %v4540_v24 }
 0x321   : > { %v1248_v15 = vadd.f32 %v4386_v37, %v1143_v32  ;;  %v4607_v5 = vmax.f32 %v1257_v19, 0.0  ;;  %v3411_v7 = vpack.i.bf16 %v4604_v17, %v4535_v33 }
 0x322   : > { %3402 = vrot.lane.b32.xlu1 %v3401_v57, %s3624_s17 }
 0x323   : > { %v1258_v52 = vadd.f32 %v3558_v23, %v1248_v15  ;;  %3412 = vrot.lane.b32.xlu0 %v3411_v7, %s3626_s20  ;;  %v1301_v50 = vrot.slane %v4607_v5, 1  ;;  %v3421_v26 = vpack.i.bf16 %v4604_v17, %v4607_v5  ;;  %v1280_v30 = vrot.slane %v4607_v5, 7 }
 0x325   : > { %v4618_v40 = vmax.f32 %v1258_v52, 0.0  ;;  %v1315_v37 = vsel %vm226_vm1, %v1301_v50, 0.0  ;;  %v4623_v33 = vsel %vm201_vm0, 0.0, %v1280_v30 }
 0x326   : > { %2901 = vmatmul.mubr.msk.f32.gmra.mrb[36].mxu0 %vm404_vm2, %v1315_v37  ;;  %3422 = vrot.lane.b32.xlu1 %v3421_v26, %s3625_s19  ;;  %v3426_v38 = vpack.i.bf16 %v4623_v33, %v4555_v42  ;;  %v3431_v0 = vpack.i.bf16 %v1315_v37, %v4567_v18 }
 0x327   : > { %3417 = vrot.lane.b32.xlu0 %v3416_v43, %s3624_s17  ;;  %v1320_v44 = vrot.slane %v4618_v40, 1  ;;  %v1317_v36 = vrot.slane %v4618_v40, 7  ;;  %v3446_v14 = vpack.i.bf16 %v4623_v33, %v4618_v40 }
 0x329   : > { %v1322_v46 = vsel %vm226_vm1, %v1320_v44, 0.0  ;;  %v1319_v58 = vsel %vm201_vm0, 0.0, %v1317_v36 }
 0x32a   : > { %2903 = vmatprep.mubr.msk.f32.mxu0 %vm404_vm2, %v1322_v46  ;;  %3427 = vrot.lane.b32.xlu1 %v3426_v38, %s3626_s20  ;;  %v3436_v25 = vpack.i.bf16 %v1319_v58, %v1313_v62  ;;  %v3441_v42 = vpack.i.bf16 %v1322_v46, %v4584_v20 }
 0x32b   : > { %2904 = vmatmul.mubr.msk.f32.gmra.mrb[38].mxu0 %vm404_vm2, %v3761_v27 }
 0x32c   : > { %3437 = vrot.lane.b32.xlu0 %v3436_v25, %s3626_s20 }
 0x32e   : > { %3432 = vrot.lane.b32.xlu1 %v3431_v0, %s3624_s17 }
 0x330   : > { %3442 = vrot.lane.b32.xlu0 %v3441_v42, %s3624_s17 }
 0x332   : > { %1361 = vrot.lane.b32.xlu1 %v1314_v22, %s3626_s20 }
 0x334   : > { %3447 = vrot.lane.b32.xlu0 %v3446_v14, %s3625_s19 }
 0x336   : > { %1335 = vrot.lane.b32.xlu1 %v4607_v5, %s3624_s17 }
 0x338   : > { %1363 = vrot.lane.b32.xlu0 %v1315_v37, %s3626_s20 }
 0x33a   : > { %1394 = vrot.lane.b32.xlu1 %v1319_v58, %s3625_s19 }
 0x379   : > { %v3353_v41 = vpop.permute.xlu0 %3352 }
 0x37a   : > { %v3355_v59 = vunpack.i.h.bf16 %v3353_v41  ;;  %v3354_v1 = vunpack.i.l.bf16 %v3353_v41 }
 0x37c   : > { %v1485_v28 = vsel %vm422_vm4, %v3978_v34, %v3355_v59 }
 0x37d   : > { %v3358_v21 = vpop.permute.xlu0 %3357 }
 0x37e   : > { %v3360_v47 = vunpack.i.h.bf16 %v3358_v21  ;;  %v3359_v45 = vunpack.i.l.bf16 %v3358_v21 }
 0x380   : > { %v3363_v53 = vpop.permute.xlu1 %3362  ;;  %v1493_v2 = vsel %vm404_vm2, %v4467_v29, %v3359_v45  ;;  %v1494_v62 = vsel %vm404_vm2, %v4488_v55, %v3360_v47 }
 0x381   : > { %v3364_v4 = vunpack.i.l.bf16 %v3363_v53  ;;  %v3365_v22 = vunpack.i.h.bf16 %v3363_v53 }
 0x384   : > { %v3368_v61 = vpop.permute.xlu1 %3367 }
 0x385   : > { %v3370_v60 = vunpack.i.h.bf16 %v3368_v61  ;;  %v3369_v63 = vunpack.i.l.bf16 %v3368_v61  ;;  %v3378_v49 = vpop.permute.xlu0 %3377 }
 0x386   : > { %v3379_v57 = vunpack.i.l.bf16 %v3378_v49  ;;  %v3380_v58 = vunpack.i.h.bf16 %v3378_v49 }
 0x387   : > { %v1501_v39 = vsel %vm413_vm3, %v1493_v2, %v3369_v63  ;;  %v1502_v3 = vsel %vm413_vm3, %v1494_v62, %v3370_v60 }
 0x388   : > { %v3373_v54 = vpop.permute.xlu1 %3372  ;;  %v1509_v8 = vsel %vm422_vm4, %v1501_v39, %v3354_v1  ;;  %v1510_v19 = vsel %vm422_vm4, %v1502_v3, %v3364_v4 }
 0x389   : > { %v3375_v9 = vunpack.i.h.bf16 %v3373_v54  ;;  %v3374_v10 = vunpack.i.l.bf16 %v3373_v54  ;;  %v3383_v11 = vpop.permute.xlu0 %3382  ;;  %1640 = vmatprep.mubr.f32.mxu1 %v1509_v8 }
 0x38a   : > { %v3385_v32 = vunpack.i.h.bf16 %v3383_v11  ;;  %v3384_v16 = vunpack.i.l.bf16 %v3383_v11  ;;  %1641 = vmatmul.mubr.f32.vlgmr.msra.gmra.mrb[16].mxu1 %v1485_v28 }
 0x38b   : > { %1645 = vmatprep.mubr.f32.mxu1 %v1510_v19  ;;  %v1471_v15 = vsel %vm404_vm2, %v4491_v56, %v3374_v10  ;;  %v1495_v7 = vsel %vm404_vm2, %v4521_v13, %v3375_v9 }
 0x38c   : > { %v3393_v23 = vpop.permute.xlu1 %3392  ;;  %v1478_v52 = vsel %vm413_vm3, %v1471_v15, %v3384_v16  ;;  %v1503_v50 = vsel %vm413_vm3, %v1495_v7, %v3385_v32 }
 0x38d   : > { %v3388_v26 = vpop.permute.xlu0 %3387  ;;  %v1486_v30 = vsel %vm422_vm4, %v1478_v52, %v3365_v22  ;;  %v1511_v37 = vsel %vm422_vm4, %v1503_v50, %v3379_v57  ;;  %v3394_v25 = vunpack.i.l.bf16 %v3393_v23 }
 0x38e   : > { %v3390_v43 = vunpack.i.h.bf16 %v3388_v26  ;;  %v3389_v44 = vunpack.i.l.bf16 %v3388_v26  ;;  %1646 = vmatmul.mubr.f32.gmra.mrb[18].mxu1 %v1486_v30 }
 0x38f   : > { %1650 = vmatprep.mubr.f32.mxu1 %v1511_v37 }
 0x390   : > { %v3398_v36 = vpop.permute.xlu1 %3397  ;;  %v1472_v0 = vsel %vm404_vm2, %v4526_v6, %v3389_v44  ;;  %v1496_v42 = vsel %vm404_vm2, %v4540_v24, %v3390_v43  ;;  %v3395_v6 = vunpack.i.h.bf16 %v3393_v23 }
 0x391   : > { %v3400_v38 = vunpack.i.h.bf16 %v3398_v36  ;;  %v3399_v56 = vunpack.i.l.bf16 %v3398_v36  ;;  %v3408_v46 = vpop.permute.xlu0 %3407 }
 0x392   : > { %v3409_v49 = vunpack.i.l.bf16 %v3408_v46  ;;  %v3410_v32 = vunpack.i.h.bf16 %v3408_v46 }
 0x393   : > { %v1479_v14 = vsel %vm413_vm3, %v1472_v0, %v3399_v56  ;;  %v1504_v41 = vsel %vm413_vm3, %v1496_v42, %v3400_v38 }
 0x394   : > { %v3403_v21 = vpop.permute.xlu1 %3402  ;;  %v1487_v53 = vsel %vm422_vm4, %v1479_v14, %v3380_v58  ;;  %v1512_v47 = vsel %vm422_vm4, %v1504_v41, %v3394_v25 }
 0x395   : > { %v3405_v45 = vunpack.i.h.bf16 %v3403_v21  ;;  %v3404_v61 = vunpack.i.l.bf16 %v3403_v21  ;;  %v3413_v59 = vpop.permute.xlu0 %3412  ;;  %1651 = vmatmul.mubr.f32.gmra.mrb[20].mxu1 %v1487_v53 }
 0x396   : > { %v3415_v60 = vunpack.i.h.bf16 %v3413_v59  ;;  %v3414_v63 = vunpack.i.l.bf16 %v3413_v59  ;;  %1655 = vmatprep.mubr.f32.mxu1 %v1512_v47 }
 0x397   : > { %v1473_v1 = vsel %vm404_vm2, %v4538_v12, %v3404_v61  ;;  %v1497_v2 = vsel %vm404_vm2, %v4567_v18, %v3405_v45 }
 0x398   : > { %v3423_v62 = vpop.permute.xlu1 %3422  ;;  %v1480_v39 = vsel %vm413_vm3, %v1473_v1, %v3414_v63  ;;  %v1505_v3 = vsel %vm413_vm3, %v1497_v2, %v3415_v60 }
 0x399   : > { %v3418_v4 = vpop.permute.xlu0 %3417  ;;  %v1488_v54 = vsel %vm422_vm4, %v1480_v39, %v3395_v6  ;;  %v1513_v8 = vsel %vm422_vm4, %v1505_v3, %v3409_v49  ;;  %v3424_v16 = vunpack.i.l.bf16 %v3423_v62  ;;  %v3425_v44 = vunpack.i.h.bf16 %v3423_v62  ;;  %v2553_v39 = vld [vmem:[%s5141_s1 + $0x460] sm:$0xff]  ;;  %v2554_v3 = vld [vmem:[%s5141_s1 + $0x468] sm:$0xff] }
 0x39a   : > { %v3420_v9 = vunpack.i.h.bf16 %v3418_v4  ;;  %v3419_v10 = vunpack.i.l.bf16 %v3418_v4  ;;  %1656 = vmatmul.mubr.f32.gmra.mrb[22].mxu1 %v1488_v54  ;;  %v3078_v54 = vpack.c.bf16 %v2554_v3, %v2553_v39  ;;  %v2547_v3 = vld [vmem:[%s5141_s1 + $0x430] sm:$0xff] }
 0x39b   : > { %1660 = vmatprep.mubr.f32.mxu1 %v1513_v8 }
 0x39c   : > { %v3428_v11 = vpop.permute.xlu1 %3427  ;;  %v1474_v22 = vsel %vm404_vm2, %v4558_v51, %v3419_v10  ;;  %v1498_v57 = vsel %vm404_vm2, %v4584_v20, %v3420_v9  ;;  %3079 = vmatprep.subr.bf16.mxu0 %v3078_v54  ;;  %v2555_v9 = vld [vmem:[%s5141_s1 + $0x470] sm:$0xff]  ;;  %v2556_v10 = vld [vmem:[%s5141_s1 + $0x478] sm:$0xff] }
 0x39d   : > { %v3430_v28 = vunpack.i.h.bf16 %v3428_v11  ;;  %v3429_v12 = vunpack.i.l.bf16 %v3428_v11  ;;  %3081 = vmatpush3.bf16.msra.mxu0 %v3078_v54  ;;  %v3082_v11 = vpack.c.bf16 %v2556_v10, %v2555_v9  ;;  %v2548_v54 = vld [vmem:[%s5141_s1 + $0x438] sm:$0xff]  ;;  %v2531_v9 = vld [vmem:[%s5141_s1 + $0x3b0] sm:$0xff] }
 0x39e   : > { %v3438_v19 = vpop.permute.xlu0 %3437 }
 0x39f   : > { %v1481_v15 = vsel %vm413_vm3, %v1474_v22, %v3429_v12  ;;  %v1506_v7 = vsel %vm413_vm3, %v1498_v57, %v3430_v28  ;;  %v3439_v37 = vunpack.i.l.bf16 %v3438_v19  ;;  %v3440_v14 = vunpack.i.h.bf16 %v3438_v19  ;;  %3083 = vmatprep.subr.bf16.mxu0 %v3082_v11  ;;  %v2537_v19 = vld [vmem:[%s5141_s1 + $0x3e0] sm:$0xff]  ;;  %v2538_v22 = vld [vmem:[%s5141_s1 + $0x3e8] sm:$0xff] }
 0x3a0   : > { %v3433_v23 = vpop.permute.xlu1 %3432  ;;  %v1489_v52 = vsel %vm422_vm4, %v1481_v15, %v3410_v32  ;;  %v1514_v50 = vsel %vm422_vm4, %v1506_v7, %v3424_v16  ;;  %v2521_v57 = vld [vmem:[%s5141_s1 + $0x360] sm:$0xff]  ;;  %v3046_v15 = vpack.c.bf16 %v2538_v22, %v2537_v19  ;;  %v2522_v7 = vld [vmem:[%s5141_s1 + $0x368] sm:$0xff]  ;;  %v2532_v19 = vld [vmem:[%s5141_s1 + $0x3b8] sm:$0xff] }
 0x3a1   : > { %v3435_v26 = vunpack.i.h.bf16 %v3433_v23  ;;  %v3434_v30 = vunpack.i.l.bf16 %v3433_v23  ;;  %1661 = vmatmul.mubr.f32.gmra.mrb[24].mxu1 %v1489_v52  ;;  %3085 = vmatpush3.bf16.msra.mxu0 %v3082_v11  ;;  %v2539_v23 = vld [vmem:[%s5141_s1 + $0x3f0] sm:$0xff]  ;;  %v2540_v52 = vld [vmem:[%s5141_s1 + $0x3f8] sm:$0xff]  ;;  %v3068_v22 = vpack.c.bf16 %v2532_v19, %v2531_v9 }
 0x3a2   : > { %v3443_v43 = vpop.permute.xlu0 %3442  ;;  %1665 = vmatprep.mubr.f32.mxu1 %v1514_v50  ;;  %v3048_v50 = vpack.c.bf16 %v2522_v7, %v2521_v57  ;;  %3047 = vmatprep.subr.bf16.mxu1 %v3046_v15  ;;  %v2549_v7 = vld [vmem:[%s5141_s1 + $0x440] sm:$0xff] }
 0x3a3   : > { %v3445_v51 = vunpack.i.h.bf16 %v3443_v43  ;;  %v3444_v36 = vunpack.i.l.bf16 %v3443_v43  ;;  %v1475_v38 = vsel %vm404_vm2, %v4582_v48, %v3434_v30  ;;  %v1499_v0 = vsel %vm404_vm2, %v4607_v5, %v3435_v26  ;;  %v2523_v30 = vld [vmem:[%s5141_s1 + $0x370] sm:$0xff]  ;;  %v2541_v43 = vld [vmem:[%s5141_s1 + $0x400] sm:$0xff] }
 0x3a4   : > { %v1362_v56 = vpop.permute.xlu1 %1361  ;;  %v1482_v46 = vsel %vm413_vm3, %v1475_v38, %v3439_v37  ;;  %v1507_v45 = vsel %vm413_vm3, %v1499_v0, %v3440_v14  ;;  %v3050_v26 = vpack.c.bf16 %v2540_v52, %v2539_v23  ;;  %v2524_v37 = vld [vmem:[%s5141_s1 + $0x378] sm:$0xff]  ;;  %3049 = vmatpush3.bf16.msra.mxu1 %v3048_v50  ;;  %v2525_v38 = vld [vmem:[%s5141_s1 + $0x380] sm:$0xff]  ;;  %v2550_v23 = vld [vmem:[%s5141_s1 + $0x448] sm:$0xff] }
 0x3a5   : > { %v1476_v58 = vsel %vm404_vm2, %v4604_v17, %v3444_v36  ;;  %v1490_v25 = vsel %vm422_vm4, %v1482_v46, %v3425_v44  ;;  %v1500_v42 = vsel %vm404_vm2, %v4618_v40, %v3445_v51  ;;  %v2542_v44 = vld [vmem:[%s5141_s1 + $0x408] sm:$0xff]  ;;  %v3052_v51 = vpack.c.bf16 %v2524_v37, %v2523_v30  ;;  %v2543_v46 = vld [vmem:[%s5141_s1 + $0x410] sm:$0xff]  ;;  %v2528_v14 = vld [vmem:[%s5141_s1 + $0x398] sm:$0xff] }
 0x3a6   : > { %v3448_v41 = vpop.permute.xlu0 %3447  ;;  %1666 = vmatmul.mubr.f32.gmra.mrb[26].mxu1 %v1490_v25  ;;  %v1483_v48 = vsel %vm413_vm3, %v1476_v58, %v1362_v56  ;;  %v1508_v17 = vsel %vm413_vm3, %v1500_v42, %v4032_v31  ;;  %3051 = vmatprep.subr.bf16.mxu1 %v3050_v26  ;;  %v3054_v36 = vpack.c.bf16 %v2542_v44, %v2541_v43  ;;  %v2526_v56 = vld [vmem:[%s5141_s1 + $0x388] sm:$0xff]  ;;  %v2544_v58 = vld [vmem:[%s5141_s1 + $0x418] sm:$0xff]  ;;  %v2527_v42 = vld [vmem:[%s5141_s1 + $0x390] sm:$0xff] }
 0x3a7   : > { %v3450_v21 = vunpack.i.h.bf16 %v3448_v41  ;;  %v3449_v53 = vunpack.i.l.bf16 %v3448_v41  ;;  %v1516_v49 = vsel %vm422_vm4, %v1508_v17, %v4034_v35  ;;  %v3056_v25 = vpack.c.bf16 %v2526_v56, %v2525_v38  ;;  %v2546_v17 = vld [vmem:[%s5141_s1 + $0x428] sm:$0xff]  ;;  %v2533_v52 = vld [vmem:[%s5141_s1 + $0x3c0] sm:$0xff] }
 0x3a8   : > { %v1336_v47 = vpop.permute.xlu1 %1335  ;;  %3053 = vmatpush3.bf16.msra.mxu1 %v3052_v51  ;;  %v3058_v0 = vpack.c.bf16 %v2544_v58, %v2543_v46  ;;  %v3060_v41 = vpack.c.bf16 %v2528_v14, %v2527_v42  ;;  %v3070_v26 = vpack.c.bf16 %v2550_v23, %v2549_v7  ;;  %v2551_v58 = vld [vmem:[%s5141_s1 + $0x450] sm:$0xff] }
 0x3a9   : > { %v1477_v61 = vsel %vm404_vm2, %v4623_v33, %v1336_v47  ;;  %v1515_v59 = vsel %vm422_vm4, %v1507_v45, %v3449_v53  ;;  %v1491_v60 = vsel %vm422_vm4, %v1483_v48, %v3450_v21  ;;  %3055 = vmatprep.subr.bf16.mxu1 %v3054_v36  ;;  %v4792_v53 = vld [vmem:[%s5142_s2 + $0x2] ss:$0 sm:$0xff] }
 0x3aa   : > { %v1364_v63 = vpop.permute.xlu0 %1363  ;;  %1670 = vmatprep.mubr.f32.mxu1 %v1515_v59  ;;  %v2545_v45 = vld [vmem:[%s5141_s1 + $0x420] sm:$0xff] }
 0x3ab   : > { %v1484_v6 = vsel %vm413_vm3, %v1477_v61, %v1364_v63  ;;  %1671 = vmatmul.mubr.f32.gmra.mrb[28].mxu1 %v1491_v60  ;;  %v2529_v61 = vld [vmem:[%s5141_s1 + $0x3a0] sm:$0xff]  ;;  %v3062_v63 = vpack.c.bf16 %v2546_v17, %v2545_v45 }
 0x3ac   : > { %v1395_v1 = vpop.permute.xlu1 %1394  ;;  %1675 = vmatprep.mubr.f32.mxu1 %v1516_v49  ;;  %3057 = vmatpush3.bf16.msra.mxu1 %v3056_v25  ;;  %v2552_v25 = vld [vmem:[%s5141_s1 + $0x458] sm:$0xff] }
 0x3ad   : > { %v1492_v2 = vsel %vm422_vm4, %v1484_v6, %v1395_v1  ;;  %3059 = vmatprep.subr.bf16.mxu1 %v3058_v0  ;;  %v2530_v6 = vld [vmem:[%s5141_s1 + $0x3a8] sm:$0xff]  ;;  %v2535_v0 = vld [vmem:[%s5141_s1 + $0x3d0] sm:$0xff] }
 0x3ae   : > { %v3064_v1 = vpack.c.bf16 %v2530_v6, %v2529_v61 }
 0x3af   : > { %1676 = vmatmul.mubr.f32.gmra.mrb[30].mxu1 %v1492_v2 }
 0x3b0   : > { %3061 = vmatpush3.bf16.msra.mxu1 %v3060_v41 }
 0x3b1   : > { %3063 = vmatprep.subr.bf16.mxu1 %v3062_v63 }
 0x3b4   : > { %3065 = vmatpush3.bf16.msra.mxu1 %v3064_v1 }
 0x3e2   : > { %v4715_v62 = vpop.f32.mrb[32].mxu0 }
 0x3e3   : > { %v1747_v33 = vpop.f32.mrb[33].mxu0 }
 0x3ee   : > { %v4723_v4 = vpop.f32.mrb[34].mxu0 }
 0x3ef   : > { %v4725_v8 = vpop.f32.mrb[35].mxu0 }
 0x3f9   : > { %v4733_v28 = vpop.f32.mrb[36].mxu0 }
 0x3fa   : > { %v4735_v12 = vpop.f32.mrb[37].mxu0 }
 0x3fe   : > { %v4737_v32 = vpop.f32.mrb[38].mxu0 }
 0x3ff   : > { %v4739_v16 = vpop.f32.mrb[39].mxu0 }
 0x45d   : > { %v2742_v21 = vpop.f32.mrb[16].mxu1 }
 0x45e   : > { %v2743_v48 = vpop.f32.mrb[17].mxu1 }
 0x45f   : > { %v2744_v47 = vadd.f32 %v2743_v48, %v2742_v21  ;;  %v3074_v48 = vpack.c.bf16 %v2552_v25, %v2551_v58 }
 0x461   : > { %v1643_v59 = vadd.f32 %v2744_v47, %v4792_v53  ;;  %v2745_v60 = vpop.f32.mrb[18].mxu1  ;;  %v2536_v47 = vld [vmem:[%s5141_s1 + $0x3d8] sm:$0xff] }
 0x462   : > { %v2746_v49 = vpop.f32.mrb[19].mxu1 }
 0x463   : > { %v1748_v2 = vadd.f32 %v1747_v33, %v1643_v59  ;;  %v2747_v39 = vadd.f32 %v2746_v49, %v2745_v60  ;;  %v3066_v33 = vpack.c.bf16 %v2548_v54, %v2547_v3  ;;  %v3076_v59 = vpack.c.bf16 %v2536_v47, %v2535_v0 }
 0x465   : > { %v4816_v10 = vmax.f32 %v1748_v2, 0.0  ;;  %v1648_v11 = vadd.f32 %v2747_v39, %v4792_v53  ;;  %3067 = vmatprep.subr.bf16.mxu1 %v3066_v33 }
 0x466   : > { %3069 = vmatpush3.bf16.msra.mxu1 %v3068_v22 }
 0x467   : > { %v1753_v57 = vadd.f32 %v4715_v62, %v1648_v11  ;;  %v1801_v15 = vrot.slane %v4816_v10, 7  ;;  %v2534_v62 = vld [vmem:[%s5141_s1 + $0x3c8] sm:$0xff]  ;;  %v1822_v44 = vrot.slane %v4816_v10, 1  ;;  %3071 = vmatprep.subr.bf16.mxu1 %v3070_v26 }
 0x468   : > { %v2748_v50 = vpop.f32.mrb[20].mxu1  ;;  %v3072_v51 = vpack.c.bf16 %v2534_v62, %v2533_v52 }
 0x469   : > { %v4836_v30 = vmax.f32 %v1753_v57, 0.0  ;;  %v2749_v37 = vpop.f32.mrb[21].mxu1  ;;  %v4839_v43 = vsel %vm201_vm0, 0.0, %v1801_v15  ;;  %v1836_v41 = vsel %vm226_vm1, %v1822_v44, 0.0 }
 0x46a   : > { %v2750_v36 = vadd.f32 %v2749_v37, %v2748_v50  ;;  %3073 = vmatpush3.bf16.msra.mxu1 %v3072_v51 }
 0x46b   : > { %v3451_v38 = vpack.i.bf16 %v4839_v43, %v4836_v30  ;;  %v1823_v56 = vrot.slane %v4836_v30, 1  ;;  %v1802_v21 = vrot.slane %v4836_v30, 7  ;;  %3075 = vmatprep.subr.bf16.mxu1 %v3074_v48 }
 0x46c   : > { %v1653_v46 = vadd.f32 %v2750_v36, %v4792_v53 }
 0x46d   : > { %3452 = vrot.lane.b32.xlu0 %v3451_v38, %s3625_s19  ;;  %v2751_v42 = vpop.f32.mrb[22].mxu1  ;;  %v4857_v14 = vsel %vm226_vm1, %v1823_v56, 0.0  ;;  %v4873_v49 = vsel %vm201_vm0, 0.0, %v1802_v21 }
 0x46e   : > { %v1758_v45 = vadd.f32 %v4725_v8, %v1653_v46  ;;  %v2752_v17 = vpop.f32.mrb[23].mxu1  ;;  %2914 = vmatprep.mubr.msk.f32.mxu0 %vm404_vm2, %v4857_v14  ;;  %v3456_v61 = vpack.i.bf16 %v4857_v14, %v1836_v41  ;;  %3077 = vmatpush3.bf16.msra.mxu1 %v3076_v59 }
 0x46f   : > { %v2753_v60 = vadd.f32 %v2752_v17, %v2751_v42 }
 0x470   : > { %v4868_v63 = vmax.f32 %v1758_v45, 0.0 }
 0x471   : > { %v1658_v6 = vadd.f32 %v2753_v60, %v4792_v53  ;;  %3457 = vrot.lane.b32.xlu0 %v3456_v61, %s3624_s17 }
 0x472   : > { %v3461_v8 = vpack.i.bf16 %v4873_v49, %v4868_v63  ;;  %v1824_v1 = vrot.slane %v4868_v63, 1  ;;  %v1803_v2 = vrot.slane %v4868_v63, 7 }
 0x473   : > { %v1763_v39 = vadd.f32 %v4723_v4, %v1658_v6 }
 0x474   : > { %v2754_v3 = vpop.f32.mrb[24].mxu1  ;;  %3462 = vrot.lane.b32.xlu1 %v3461_v8, %s3625_s19  ;;  %v1838_v54 = vsel %vm226_vm1, %v1824_v1, 0.0  ;;  %v4883_v9 = vsel %vm201_vm0, 0.0, %v1803_v2 }
 0x475   : > { %v4885_v11 = vmax.f32 %v1763_v39, 0.0  ;;  %v2755_v33 = vpop.f32.mrb[25].mxu1  ;;  %2915 = vmatmul.mubr.msk.f32.vlgmr.msra.gmra.mrb[40].mxu0 %vm404_vm2, %v1838_v54  ;;  %v3466_v19 = vpack.i.bf16 %v4883_v9, %v4873_v49  ;;  %v3471_v37 = vpack.i.bf16 %v1838_v54, %v4816_v10 }
 0x476   : > { %v2756_v22 = vadd.f32 %v2755_v33, %v2754_v3 }
 0x477   : > { %v3476_v4 = vpack.i.bf16 %v4883_v9, %v4885_v11  ;;  %v1825_v57 = vrot.slane %v4885_v11, 1  ;;  %v1804_v15 = vrot.slane %v4885_v11, 7 }
 0x478   : > { %v1663_v7 = vadd.f32 %v2756_v22, %v4792_v53  ;;  %3467 = vrot.lane.b32.xlu1 %v3466_v19, %s3626_s20 }
 0x479   : > { %v2757_v23 = vpop.f32.mrb[26].mxu1  ;;  %3477 = vrot.lane.b32.xlu0 %v3476_v4, %s3625_s19  ;;  %v4898_v52 = vsel %vm226_vm1, %v1825_v57, 0.0  ;;  %v4901_v50 = vsel %vm201_vm0, 0.0, %v1804_v15 }
 0x47a   : > { %v1768_v26 = vadd.f32 %v4735_v12, %v1663_v7  ;;  %v2758_v62 = vpop.f32.mrb[27].mxu1  ;;  %2917 = vmatprep.mubr.msk.f32.mxu0 %vm404_vm2, %v4898_v52  ;;  %v3481_v44 = vpack.i.bf16 %v4901_v50, %v1836_v41  ;;  %v3486_v42 = vpack.i.bf16 %v4898_v52, %v4836_v30 }
 0x47b   : > { %v2759_v51 = vadd.f32 %v2758_v62, %v2757_v23 }
 0x47c   : > { %v4908_v36 = vmax.f32 %v1768_v26, 0.0  ;;  %3472 = vrot.lane.b32.xlu1 %v3471_v37, %s3624_s17 }
 0x47d   : > { %v1668_v38 = vadd.f32 %v2759_v51, %v4792_v53  ;;  %3482 = vrot.lane.b32.xlu0 %v3481_v44, %s3626_s20 }
 0x47e   : > { %v2760_v56 = vpop.f32.mrb[28].mxu1  ;;  %v3491_v12 = vpack.i.bf16 %v4901_v50, %v4908_v36  ;;  %v1826_v46 = vrot.slane %v4908_v36, 1  ;;  %v1805_v58 = vrot.slane %v4908_v36, 7 }
 0x47f   : > { %v1773_v25 = vadd.f32 %v4733_v28, %v1668_v38  ;;  %v2761_v0 = vpop.f32.mrb[29].mxu1 }
 0x480   : > { %v2762_v41 = vadd.f32 %v2761_v0, %v2760_v56  ;;  %3492 = vrot.lane.b32.xlu1 %v3491_v12, %s3625_s19  ;;  %v1840_v21 = vsel %vm226_vm1, %v1826_v46, 0.0  ;;  %v4923_v48 = vsel %vm201_vm0, 0.0, %v1805_v58 }
 0x481   : > { %v4925_v47 = vmax.f32 %v1773_v25, 0.0  ;;  %2918 = vmatmul.mubr.msk.f32.gmra.mrb[42].mxu0 %vm404_vm2, %v1840_v21  ;;  %3487 = vrot.lane.b32.xlu0 %v3486_v42, %s3624_s17  ;;  %v3496_v28 = vpack.i.bf16 %v4923_v48, %v4857_v14  ;;  %v3501_v33 = vpack.i.bf16 %v1840_v21, %v4868_v63 }
 0x482   : > { %v2763_v45 = vpop.f32.mrb[30].mxu1  ;;  %v1673_v17 = vadd.f32 %v2762_v41, %v4792_v53 }
 0x483   : > { %v2764_v61 = vpop.f32.mrb[31].mxu1  ;;  %v3506_v59 = vpack.i.bf16 %v4923_v48, %v4925_v47  ;;  %v1827_v60 = vrot.slane %v4925_v47, 1  ;;  %v1806_v6 = vrot.slane %v4925_v47, 7 }
 0x484   : > { %v2765_v8 = vadd.f32 %v2764_v61, %v2763_v45  ;;  %v1778_v1 = vadd.f32 %v4739_v16, %v1673_v17  ;;  %3497 = vrot.lane.b32.xlu1 %v3496_v28, %s3626_s20 }
 0x485   : > { %3507 = vrot.lane.b32.xlu0 %v3506_v59, %s3625_s19  ;;  %v1841_v14 = vsel %vm226_vm1, %v1827_v60, 0.0  ;;  %v4941_v2 = vsel %vm201_vm0, 0.0, %v1806_v6 }
 0x486   : > { %v1678_v39 = vadd.f32 %v2765_v8, %v4792_v53  ;;  %v4944_v3 = vmax.f32 %v1778_v1, 0.0  ;;  %2920 = vmatprep.mubr.msk.f32.mxu0 %vm404_vm2, %v1841_v14  ;;  %v3511_v19 = vpack.i.bf16 %v4941_v2, %v1838_v54  ;;  %v3516_v54 = vpack.i.bf16 %v1841_v14, %v4885_v11 }
 0x488   : > { %v1783_v16 = vadd.f32 %v4737_v32, %v1678_v39  ;;  %3502 = vrot.lane.b32.xlu1 %v3501_v33, %s3624_s17  ;;  %v1828_v22 = vrot.slane %v4944_v3, 1  ;;  %v1807_v4 = vrot.slane %v4944_v3, 7  ;;  %v3521_v15 = vpack.i.bf16 %v4941_v2, %v4944_v3 }
 0x489   : > { %3512 = vrot.lane.b32.xlu0 %v3511_v19, %s3626_s20 }
 0x48a   : > { %v4954_v57 = vmax.f32 %v1783_v16, 0.0  ;;  %v1842_v53 = vsel %vm226_vm1, %v1828_v22, 0.0  ;;  %v4962_v32 = vsel %vm201_vm0, 0.0, %v1807_v4 }
 0x48b   : > { %2921 = vmatmul.mubr.msk.f32.gmra.mrb[44].mxu0 %vm404_vm2, %v1842_v53  ;;  %v3526_v62 = vpack.i.bf16 %v4962_v32, %v4898_v52  ;;  %v3531_v51 = vpack.i.bf16 %v1842_v53, %v4908_v36 }
 0x48c   : > { %3522 = vrot.lane.b32.xlu1 %v3521_v15, %s3625_s19  ;;  %v1847_v7 = vrot.slane %v4954_v57, 1  ;;  %v1844_v23 = vrot.slane %v4954_v57, 7  ;;  %v3546_v52 = vpack.i.bf16 %v4962_v32, %v4954_v57 }
 0x48d   : > { %3517 = vrot.lane.b32.xlu0 %v3516_v54, %s3624_s17 }
 0x48e   : > { %v1849_v26 = vsel %vm226_vm1, %v1847_v7, 0.0  ;;  %v1846_v37 = vsel %vm201_vm0, 0.0, %v1844_v23 }
 0x48f   : > { %2923 = vmatprep.mubr.msk.f32.mxu0 %vm404_vm2, %v1849_v26  ;;  %v3536_v44 = vpack.i.bf16 %v1846_v37, %v1840_v21  ;;  %v3541_v38 = vpack.i.bf16 %v1849_v26, %v4925_v47 }
 0x490   : > { %3527 = vrot.lane.b32.xlu1 %v3526_v62, %s3626_s20  ;;  %2924 = vmatmul.mubr.msk.f32.gmra.mrb[46].mxu0 %vm404_vm2, %v3761_v27 }
 0x491   : > { %3537 = vrot.lane.b32.xlu0 %v3536_v44, %s3626_s20 }
 0x494   : > { %3532 = vrot.lane.b32.xlu1 %v3531_v51, %s3624_s17 }
 0x495   : > { %3542 = vrot.lane.b32.xlu0 %v3541_v38, %s3624_s17 }
 0x498   : > { %1888 = vrot.lane.b32.xlu1 %v1841_v14, %s3626_s20 }
 0x499   : > { %3547 = vrot.lane.b32.xlu0 %v3546_v52, %s3625_s19 }
 0x49c   : > { %1862 = vrot.lane.b32.xlu1 %v4944_v3, %s3624_s17 }
 0x49d   : > { %1890 = vrot.lane.b32.xlu0 %v1842_v53, %s3626_s20  ;;  %s161_s20 = sand.u32 1, %s3613_s13  }
 0x49e   : > { %s2417_s7 = sshll.u32 %s161_s20, 6  ;;  %s5099_s16 = scalar_lea.sflag [#allocation3], %s161_s20 }
 0x49f   : > { %s5062_s4 = scalar_lea.vmem [#allocation2], %s2417_s7 }
 0x4a0   : > { %1921 = vrot.lane.b32.xlu1 %v1846_v37, %s3625_s19  ;;  %s2351_s9 = sshll.u32 %s5062_s4, 4  ;;  %s5093_s9 = int_to_ptr.vmem [resolvable:$true] %s2351_s9 }
 0x4a1   : > { %s3559_s25 = scalar_lea.vmem %s5093_s9, 1024  ;;  %p3566_p0 = scmp.lt.s32.totalorder %s5093_s9, %s3564_s27 }
 0x4a2   : > { %p3560_p11 = scmp.ne.s32.totalorder %s5093_s9, %s3559_s25  ;;  %p3567_p1 = scmp.lt.s32.totalorder %s3565_s28, %s3559_s25 }
 0x4a4   : > { %p3561_p12 = pnand %p3560_p11, %p3688_p5  ;;  %p3568_p2 = por %p3567_p1, %p3566_p0 }
 0x4a6   : > { %p3562_p13 = pneg %p3561_p12 }
 0x4a8   : > { %p3569_p3 = pnand %p3568_p2, %p3562_p13 }
 0x4df   : > { %v3453_v27 = vpop.permute.xlu0 %3452 }
 0x4e0   : > { %v3455_v0 = vunpack.i.h.bf16 %v3453_v27  ;;  %v3454_v28 = vunpack.i.l.bf16 %v3453_v27 }
 0x4e2   : > { %v2012_v33 = vsel %vm422_vm4, %v3978_v34, %v3455_v0 }
 0x4e3   : > { %v3458_v56 = vpop.permute.xlu0 %3457 }
 0x4e4   : > { %v3460_v46 = vunpack.i.h.bf16 %v3458_v56  ;;  %v3459_v58 = vunpack.i.l.bf16 %v3458_v56 }
 0x4e6   : > { %v3463_v12 = vpop.permute.xlu1 %3462  ;;  %v2020_v45 = vsel %vm404_vm2, %v4816_v10, %v3459_v58  ;;  %v2021_v17 = vsel %vm404_vm2, %v4836_v30, %v3460_v46 }
 0x4e7   : > { %v3464_v60 = vunpack.i.l.bf16 %v3463_v12  ;;  %v3465_v16 = vunpack.i.h.bf16 %v3463_v12 }
 0x4ea   : > { %v3468_v25 = vpop.permute.xlu1 %3467 }
 0x4eb   : > { %v3470_v42 = vunpack.i.h.bf16 %v3468_v25  ;;  %v3469_v41 = vunpack.i.l.bf16 %v3468_v25  ;;  %v3478_v21 = vpop.permute.xlu0 %3477 }
 0x4ec   : > { %v3479_v22 = vunpack.i.l.bf16 %v3478_v21  ;;  %v3480_v52 = vunpack.i.h.bf16 %v3478_v21 }
 0x4ed   : > { %v2028_v61 = vsel %vm413_vm3, %v2020_v45, %v3469_v41  ;;  %v2029_v59 = vsel %vm413_vm3, %v2021_v17, %v3470_v42 }
 0x4ee   : > { %v3473_v6 = vpop.permute.xlu1 %3472  ;;  %v2036_v8 = vsel %vm422_vm4, %v2028_v61, %v3454_v28  ;;  %v2037_v30 = vsel %vm422_vm4, %v2029_v59, %v3464_v60 }
 0x4ef   : > { %v3475_v1 = vunpack.i.h.bf16 %v3473_v6  ;;  %v3474_v14 = vunpack.i.l.bf16 %v3473_v6  ;;  %v3483_v39 = vpop.permute.xlu0 %3482  ;;  %2167 = vmatprep.mubr.f32.mxu1 %v2036_v8 }
 0x4f0   : > { %v3485_v19 = vunpack.i.h.bf16 %v3483_v39  ;;  %v3484_v10 = vunpack.i.l.bf16 %v3483_v39  ;;  %2168 = vmatmul.mubr.f32.vlgmr.msra.gmra.mrb[32].mxu1 %v2012_v33 }
 0x4f1   : > { %2172 = vmatprep.mubr.f32.mxu1 %v2037_v30  ;;  %v1998_v4 = vsel %vm404_vm2, %v4839_v43, %v3474_v14  ;;  %v2022_v53 = vsel %vm404_vm2, %v4868_v63, %v3475_v1 }
 0x4f2   : > { %v3493_v15 = vpop.permute.xlu1 %3492  ;;  %v2005_v54 = vsel %vm413_vm3, %v1998_v4, %v3484_v10  ;;  %v2030_v7 = vsel %vm413_vm3, %v2022_v53, %v3485_v19 }
 0x4f3   : > { %v3488_v34 = vpop.permute.xlu0 %3487  ;;  %v2013_v23 = vsel %vm422_vm4, %v2005_v54, %v3465_v16  ;;  %v2038_v26 = vsel %vm422_vm4, %v2030_v7, %v3479_v22  ;;  %v3494_v63 = vunpack.i.l.bf16 %v3493_v15 }
 0x4f4   : > { %v3490_v62 = vunpack.i.h.bf16 %v3488_v34  ;;  %v3489_v37 = vunpack.i.l.bf16 %v3488_v34  ;;  %2173 = vmatmul.mubr.f32.gmra.mrb[34].mxu1 %v2013_v23 }
 0x4f5   : > { %2177 = vmatprep.mubr.f32.mxu1 %v2038_v26 }
 0x4f6   : > { %v3498_v44 = vpop.permute.xlu1 %3497  ;;  %v1999_v27 = vsel %vm404_vm2, %v4873_v49, %v3489_v37  ;;  %v2023_v56 = vsel %vm404_vm2, %v4885_v11, %v3490_v62  ;;  %v3495_v49 = vunpack.i.h.bf16 %v3493_v15 }
 0x4f7   : > { %v3500_v51 = vunpack.i.h.bf16 %v3498_v44  ;;  %v3499_v43 = vunpack.i.l.bf16 %v3498_v44  ;;  %v3508_v38 = vpop.permute.xlu0 %3507 }
 0x4f8   : > { %v3509_v17 = vunpack.i.l.bf16 %v3508_v38  ;;  %v3510_v16 = vunpack.i.h.bf16 %v3508_v38 }
 0x4f9   : > { %v2006_v12 = vsel %vm413_vm3, %v1999_v27, %v3499_v43  ;;  %v2031_v46 = vsel %vm413_vm3, %v2023_v56, %v3500_v51 }
 0x4fa   : > { %v3503_v58 = vpop.permute.xlu1 %3502  ;;  %v2014_v25 = vsel %vm422_vm4, %v2006_v12, %v3480_v52  ;;  %v2039_v0 = vsel %vm422_vm4, %v2031_v46, %v3494_v63 }
 0x4fb   : > { %v3505_v42 = vunpack.i.h.bf16 %v3503_v58  ;;  %v3504_v41 = vunpack.i.l.bf16 %v3503_v58  ;;  %v3513_v28 = vpop.permute.xlu0 %3512  ;;  %2178 = vmatmul.mubr.f32.gmra.mrb[36].mxu1 %v2014_v25 }
 0x4fc   : > { %v3515_v21 = vunpack.i.h.bf16 %v3513_v28  ;;  %v3514_v45 = vunpack.i.l.bf16 %v3513_v28  ;;  %2182 = vmatprep.mubr.f32.mxu1 %v2039_v0 }
 0x4fd   : > { %v2000_v11 = vsel %vm404_vm2, %v4883_v9, %v3504_v41  ;;  %v2024_v61 = vsel %vm404_vm2, %v4908_v36, %v3505_v42 }
 0x4fe   : > { %v3523_v59 = vpop.permute.xlu1 %3522  ;;  %v2007_v60 = vsel %vm413_vm3, %v2000_v11, %v3514_v45  ;;  %v2032_v6 = vsel %vm413_vm3, %v2024_v61, %v3515_v21 }
 0x4ff   : > { %v3518_v8 = vpop.permute.xlu0 %3517  ;;  %v2015_v1 = vsel %vm422_vm4, %v2007_v60, %v3495_v49  ;;  %v2040_v14 = vsel %vm422_vm4, %v2032_v6, %v3509_v17  ;;  %v3524_v36 = vunpack.i.l.bf16 %v3523_v59 }
 0x500   : > { %v3520_v39 = vunpack.i.h.bf16 %v3518_v8  ;;  %v3519_v33 = vunpack.i.l.bf16 %v3518_v8  ;;  %2183 = vmatmul.mubr.f32.gmra.mrb[38].mxu1 %v2015_v1 }
 0x501   : > { %2187 = vmatprep.mubr.f32.mxu1 %v2040_v14 }
 0x502   : > { %v3528_v19 = vpop.permute.xlu1 %3527  ;;  %v2001_v22 = vsel %vm404_vm2, %v4901_v50, %v3519_v33  ;;  %v2025_v4 = vsel %vm404_vm2, %v4925_v47, %v3520_v39  ;;  %v3525_v50 = vunpack.i.h.bf16 %v3523_v59 }
 0x503   : > { %v3530_v10 = vunpack.i.h.bf16 %v3528_v19  ;;  %v3529_v9 = vunpack.i.l.bf16 %v3528_v19  ;;  %v3538_v30 = vpop.permute.xlu0 %3537 }
 0x504   : > { %v3539_v37 = vunpack.i.l.bf16 %v3538_v30  ;;  %v3540_v56 = vunpack.i.h.bf16 %v3538_v30 }
 0x505   : > { %v2008_v53 = vsel %vm413_vm3, %v2001_v22, %v3529_v9  ;;  %v2033_v15 = vsel %vm413_vm3, %v2025_v4, %v3530_v10 }
 0x506   : > { %v3533_v54 = vpop.permute.xlu1 %3532  ;;  %v2016_v7 = vsel %vm422_vm4, %v2008_v53, %v3510_v16  ;;  %v2041_v34 = vsel %vm422_vm4, %v2033_v15, %v3524_v36 }
 0x507   : > { %v3535_v23 = vunpack.i.h.bf16 %v3533_v54  ;;  %v3534_v26 = vunpack.i.l.bf16 %v3533_v54  ;;  %v3543_v62 = vpop.permute.xlu0 %3542  ;;  %2188 = vmatmul.mubr.f32.gmra.mrb[40].mxu1 %v2016_v7 }
 0x508   : > { %v3545_v44 = vunpack.i.h.bf16 %v3543_v62  ;;  %v3544_v51 = vunpack.i.l.bf16 %v3543_v62  ;;  %2192 = vmatprep.mubr.f32.mxu1 %v2041_v34 }
 0x509   : > { %v2002_v47 = vsel %vm404_vm2, %v4923_v48, %v3534_v26  ;;  %v2026_v63 = vsel %vm404_vm2, %v4944_v3, %v3535_v23 }
 0x50a   : > { %v2003_v43 = vsel %vm404_vm2, %v4941_v2, %v3544_v51  ;;  %v1889_v38 = vpop.permute.xlu1 %1888  ;;  %v2009_v52 = vsel %vm413_vm3, %v2002_v47, %v3539_v37  ;;  %v2027_v27 = vsel %vm404_vm2, %v4954_v57, %v3545_v44  ;;  %v2034_v2 = vsel %vm413_vm3, %v2026_v63, %v3540_v56 }
 0x50b   : > { %v3548_v12 = vpop.permute.xlu0 %3547  ;;  %v2017_v46 = vsel %vm422_vm4, %v2009_v52, %v3525_v50  ;;  %v2010_v48 = vsel %vm413_vm3, %v2003_v43, %v1889_v38  ;;  %v2035_v0 = vsel %vm413_vm3, %v2027_v27, %v4032_v31 }
 0x50c   : > { %v3550_v58 = vunpack.i.h.bf16 %v3548_v12  ;;  %v3549_v25 = vunpack.i.l.bf16 %v3548_v12  ;;  %2193 = vmatmul.mubr.f32.gmra.mrb[42].mxu1 %v2017_v46  ;;  %v2043_v21 = vsel %vm422_vm4, %v2035_v0, %v4034_v35  ;;  %v2558_v35 = vld [vmem:[%s5142_s2 + $0x3] ss:$0 sm:$0xff] }
 0x50e   : > { %v1863_v42 = vpop.permute.xlu1 %1862  ;;  %v2042_v3 = vsel %vm422_vm4, %v2034_v2, %v3549_v25  ;;  %v2018_v41 = vsel %vm422_vm4, %v2010_v48, %v3550_v58 }
 0x50f   : > { %v2004_v57 = vsel %vm404_vm2, %v4962_v32, %v1863_v42  ;;  %v1891_v28 = vpop.permute.xlu0 %1890  ;;  %2197 = vmatprep.mubr.f32.mxu1 %v2042_v3 }
 0x510   : > { %2198 = vmatmul.mubr.f32.gmra.mrb[44].mxu1 %v2018_v41  ;;  %v2011_v45 = vsel %vm413_vm3, %v2004_v57, %v1891_v28 }
 0x511   : > { %2202 = vmatprep.mubr.f32.mxu1 %v2043_v21 }
 0x512   : > { %v1922_v49 = vpop.permute.xlu1 %1921 }
 0x513   : > { %v2019_v31 = vsel %vm422_vm4, %v2011_v45, %v1922_v49 }
 0x514   : > { %2203 = vmatmul.mubr.f32.gmra.mrb[46].mxu1 %v2019_v31 }
 0x548   : > { %v2916_v17 = vpop.f32.mrb[40].mxu0 }
 0x549   : > { %v2274_v11 = vpop.f32.mrb[41].mxu0 }
 0x554   : > { %v2919_v61 = vpop.f32.mrb[42].mxu0 }
 0x555   : > { %v2284_v59 = vpop.f32.mrb[43].mxu0 }
 0x55e   : > { %v2922_v32 = vpop.f32.mrb[44].mxu0 }
 0x55f   : > { %v2294_v60 = vpop.f32.mrb[45].mxu0 }
 0x563   : > { %v5053_v6 = vpop.f32.mrb[46].mxu0 }
 0x564   : > { %v2304_v8 = vpop.f32.mrb[47].mxu0 }
 0x5c3   : > { %v2810_v1 = vpop.f32.mrb[32].mxu1 }
 0x5c4   : > { %v2811_v14 = vpop.f32.mrb[33].mxu1 }
 0x5c5   : > { %v2812_v39 = vadd.f32 %v2811_v14, %v2810_v1 }
 0x5c7   : > { %v2170_v33 = vadd.f32 %v2812_v39, %v2558_v35  ;;  %v2813_v19 = vpop.f32.mrb[34].mxu1 }
 0x5c8   : > { %v2814_v10 = vpop.f32.mrb[35].mxu1 }
 0x5c9   : > { %v2275_v9 = vadd.f32 %v2274_v11, %v2170_v33  ;;  %v2815_v30 = vadd.f32 %v2814_v10, %v2813_v19 }
 0x5cb   : > { %v2313_v16 = vadd.f32 %v2275_v9, %v4467_v29  ;;  %v2175_v36 = vadd.f32 %v2815_v30, %v2558_v35 }
 0x5cd   : > { %v2321_v22 = vmax.f32 %v2313_v16, 0.0  ;;  %v2280_v4 = vadd.f32 %v2916_v17, %v2175_v36 }
 0x5ce   : > { %v2816_v53 = vpop.f32.mrb[36].mxu1 }
 0x5cf   : > { %2329 = vst.msk [vmem:[%s5062_s4] sm:$0xff] %vm404_vm2, %v2321_v22  ;;  %v2314_v15 = vadd.f32 %v2280_v4, %v4488_v55  ;;  %v2817_v54 = vpop.f32.mrb[37].mxu1 }
 0x5d0   : > { %v2818_v7 = vadd.f32 %v2817_v54, %v2816_v53 }
 0x5d1   : > { %v2322_v34 = vmax.f32 %v2314_v15, 0.0 }
 0x5d2   : > { %v2180_v23 = vadd.f32 %v2818_v7, %v2558_v35 }
 0x5d3   : > { %2330 = vst.msk [vmem:[%s5062_s4 + $0x8] sm:$0xff] %vm404_vm2, %v2322_v34  ;;  %v2819_v29 = vpop.f32.mrb[38].mxu1 }
 0x5d4   : > { %v2285_v26 = vadd.f32 %v2284_v59, %v2180_v23  ;;  %v2820_v62 = vpop.f32.mrb[39].mxu1 }
 0x5d5   : > { %v2821_v37 = vadd.f32 %v2820_v62, %v2819_v29 }
 0x5d6   : > { %v2315_v44 = vadd.f32 %v2285_v26, %v4521_v13 }
 0x5d7   : > { %v2185_v51 = vadd.f32 %v2821_v37, %v2558_v35 }
 0x5d8   : > { %v2323_v50 = vmax.f32 %v2315_v44, 0.0 }
 0x5d9   : > { %v2290_v47 = vadd.f32 %v2919_v61, %v2185_v51 }
 0x5da   : > { %2331 = vst.msk [vmem:[%s5062_s4 + $0x10] sm:$0xff] %vm404_vm2, %v2323_v50  ;;  %v2822_v43 = vpop.f32.mrb[40].mxu1 }
 0x5db   : > { %v2316_v55 = vadd.f32 %v2290_v47, %v4540_v24  ;;  %v2823_v38 = vpop.f32.mrb[41].mxu1 }
 0x5dc   : > { %v2824_v52 = vadd.f32 %v2823_v38, %v2822_v43 }
 0x5dd   : > { %v2324_v63 = vmax.f32 %v2316_v55, 0.0 }
 0x5de   : > { %v2190_v27 = vadd.f32 %v2824_v52, %v2558_v35 }
 0x5df   : > { %2332 = vst.msk [vmem:[%s5062_s4 + $0x18] sm:$0xff] %vm404_vm2, %v2324_v63  ;;  %v2825_v56 = vpop.f32.mrb[42].mxu1 }
 0x5e0   : > { %v2295_v12 = vadd.f32 %v2294_v60, %v2190_v27  ;;  %v2826_v46 = vpop.f32.mrb[43].mxu1 }
 0x5e1   : > { %v2827_v58 = vadd.f32 %v2826_v46, %v2825_v56 }
 0x5e2   : > { %v2317_v13 = vadd.f32 %v2295_v12, %v4567_v18 }
 0x5e3   : > { %v2195_v25 = vadd.f32 %v2827_v58, %v2558_v35  ;;  %v2828_v48 = vpop.f32.mrb[44].mxu1 }
 0x5e4   : > { %v2325_v2 = vmax.f32 %v2317_v13, 0.0  ;;  %v2829_v0 = vpop.f32.mrb[45].mxu1 }
 0x5e5   : > { %v2300_v24 = vadd.f32 %v2922_v32, %v2195_v25  ;;  %v2830_v42 = vadd.f32 %v2829_v0, %v2828_v48 }
 0x5e6   : > { %2333 = vst.msk [vmem:[%s5062_s4 + $0x20] sm:$0xff] %vm404_vm2, %v2325_v2 }
 0x5e7   : > { %v2318_v3 = vadd.f32 %v2300_v24, %v4584_v20  ;;  %v2831_v41 = vpop.f32.mrb[46].mxu1  ;;  %v2200_v57 = vadd.f32 %v2830_v42, %v2558_v35 }
 0x5e8   : > { %v2832_v28 = vpop.f32.mrb[47].mxu1 }
 0x5e9   : > { %v2326_v21 = vmax.f32 %v2318_v3, 0.0  ;;  %v2833_v18 = vadd.f32 %v2832_v28, %v2831_v41  ;;  %v2305_v45 = vadd.f32 %v2304_v8, %v2200_v57 }
 0x5eb   : > { %2334 = vst.msk [vmem:[%s5062_s4 + $0x28] sm:$0xff] %vm404_vm2, %v2326_v21  ;;  %v2205_v49 = vadd.f32 %v2833_v18, %v2558_v35  ;;  %v2319_v31 = vadd.f32 %v2305_v45, %v4607_v5 }
 0x5ed   : > { %v2310_v17 = vadd.f32 %v5053_v6, %v2205_v49  ;;  %v2327_v11 = vmax.f32 %v2319_v31, 0.0 }
 0x5ef   : > { %v2320_v20 = vadd.f32 %v2310_v17, %v4618_v40  ;;  %2335 = vst.msk [vmem:[%s5062_s4 + $0x30] sm:$0xff] %vm404_vm2, %v2327_v11 }
 0x5f1   : > { %v2328_v5 = vmax.f32 %v2320_v20, 0.0 }
 0x5f3   : > { %2336 = vst.msk [vmem:[%s5062_s4 + $0x38] sm:$0xff] %vm404_vm2, %v2328_v5 }
 0x5f4   : > { %3572 = shalt.err (!%p3569_p3)
}
 0x5f5   : > { %s3573_s29 = scalar_lea.hbm %s5091_s24, 1024  ;;  %s3577_s6 = scalar_lea.hbm %s5143_s3, 2048 }
 0x5f6   : > { %p3574_p4 = scmp.ne.s32.totalorder %s5091_s24, %s3573_s29  ;;  %p3578_p9 = scmp.lt.u32.totalorder %s5091_s24, %s5143_s3 }
 0x5f7   : > { %p3579_p10 = scmp.lt.u32.totalorder %s3577_s6, %s3573_s29  ;;  %p3581_p12 = scmp.lt.u32.totalorder %s3573_s29, %s5091_s24 }
 0x5f8   : > { %p3575_p7 = pnand %p3574_p4, %p3688_p5 }
 0x5f9   : > { %p3580_p11 = por %p3579_p10, %p3578_p9 }
 0x5fa   : > { %p3576_p8 = pneg %p3575_p7 }
 0x5fb   : > { %p3582_p13 = por %p3581_p12, %p3580_p11 }
 0x5fd   : > { %p3583_p0 = pnand %p3582_p13, %p3576_p8 }
 0x5ff   : > { %3586 = shalt.err (!%p3583_p0)
}
 0x600   : > { %s3628_s20 = smov 128   ;;  %s3629_s7 = smov 8  }
 0x601   : > { %3086 = dma.vmem_to_hbm [thread:$0]  (%p3688_p5), %s5093_s9, 1024, %s5091_s24, %s5099_s16, %s3628_s20, %s3628_s20, %s3629_s7  }
 0x602 PF: > { %p3092_p1 = scmp.ge.s32.totalorder %s3621_s15, 2  ;;  %s2366_s4 = sand.u32 1, %s3609_s12  }
 0x603   : > { %s2367_s8 = scalar_lea.sflag [#allocation3], %s2366_s4 }
 0x604   : > { %p3089_p2 = pnand %p3092_p1, %p3692_p6 }
 0x606   : > { %3604 = dma.done.wait (!%p3089_p2), %s2367_s8, 1024  }
 0x607   : > { %3606 = vsyncadd (!%p3089_p2), %s2367_s8, 4294966272  ;;  %p13_p3 = scmp.ge.s32.totalorder %s3675_s18, 4   ;;  %s5146_s12 = smov %s3613_s13 }
 0x608   : > { %s5147_s13 = smov %s3617_s14  ;;  %s5148_s14 = smov %s3686_s21 }
 0x609   : > { %s5149_s15 = smov %s3675_s18  ;;  %15 = sbr.rel (!%p13_p3) target bundleno = 3 (0x3), region = 73 }
 0x610   :  { %2372 = vsyncpa [#allocation3], 1 }
 0x611   :  { %2374 = vsyncpa [#allocation3 + $0x1], 1 }

</bundles_post_ra>
